<compile_context>
chip_gen: v7x
topology: tpu7x:2x2x1
jax: 0.10.0
libtpu: 0.0.40
codegen_flags: <defaults>
</compile_context>

<pallas_src>
import jax
import jax.numpy as jnp
import numpy as np
from jax.experimental import pallas as pl
from jax.experimental.pallas import tpu as pltpu


def _sigmoid(x):
    # Numerically stable sigmoid that stays on the EUP (single tanh push).
    return 0.5 * jnp.tanh(0.5 * x) + 0.5


def _make_kernel(num_layers, chunk_len, hidden):
    L, H = num_layers, hidden
    LH = L * H
    n_steps = chunk_len + L - 1  # wavefront steps per chunk

    def kernel(x_ref, wih0_ref, wbig_ref, ball_ref, whd_ref, bhd_ref,
               h0_ref, c0_ref, y_ref, hn_ref, cn_ref, h_scr, c_scr):
        c_idx = pl.program_id(0)

        # Initialize the cross-chunk carry from the user-provided state.
        @pl.when(c_idx == 0)
        def _():
            h_scr[...] = h0_ref[...]
            c_scr[...] = c0_ref[...]

        ball = ball_ref[...]                                       # (1, 4*LH)
        wbig = wbig_ref[...]                                       # (LH, 4*LH)

        # Hoisted layer-0 input projection for the whole chunk, already in the
        # gate-type-major fused layout, with all layers' biases folded in.
        xpb = jnp.dot(x_ref[...], wih0_ref[...],
                      preferred_element_type=jnp.float32) + ball   # (chunk, 4*LH)

        # Recurrent state as (1, L*H) layer-major slabs carried in registers.
        h_all = h_scr[...]
        c_all = c_scr[...]
        lane = jax.lax.broadcasted_iota(jnp.int32, (1, LH), 1)
        last_outs = []

        # ---- Wavefront recurrence: at step s, layer l processes time (s - l) ----
        for s in range(n_steps):
            add = xpb[s:s + 1, :] if s < chunk_len else ball
            gates = jnp.dot(h_all, wbig,
                            preferred_element_type=jnp.float32) + add  # (1, 4*LH)

            # Gate-type-major columns [i | f | o | g]: one sigmoid over i/f/o,
            # one tanh over g.
            sig = _sigmoid(gates[:, :3 * LH])
            g_a = jnp.tanh(gates[:, 3 * LH:])
            i_a = sig[:, 0:LH]
            f_a = sig[:, LH:2 * LH]
            o_a = sig[:, 2 * LH:3 * LH]

            c_new = f_a * c_all + i_a * g_a
            h_new = o_a * jnp.tanh(c_new)

            # Active layers at this step form a contiguous range; edge steps use
            # a static lane-range mask, interior steps update the whole slab.
            lo_layer = max(0, s - chunk_len + 1)
            hi_layer = min(L - 1, s)
            if lo_layer == 0 and hi_layer == L - 1:
                c_all, h_all = c_new, h_new
            else:
                mk = (lane >= lo_layer * H) & (lane < (hi_layer + 1) * H)
                c_all = jnp.where(mk, c_new, c_all)
                h_all = jnp.where(mk, h_new, h_all)

            if s >= L - 1:                       # last layer produced time s-(L-1)
                last_outs.append(h_all[:, (L - 1) * H:])

        # ---- Fused Linear head + sigmoid; single bulk store per chunk ----
        seq_out = jnp.concatenate(last_outs, axis=0)               # (chunk, H)
        y_ref[...] = _sigmoid(
            jnp.dot(seq_out, whd_ref[...],
                    preferred_element_type=jnp.float32) + bhd_ref[...])

        # Persist the carry for the next chunk and expose it as outputs
        # (the hn/cn blocks are grid-resident; final write-back is once).
        h_scr[...] = h_all
        c_scr[...] = c_all
        hn_ref[...] = h_all
        cn_ref[...] = c_all

    return kernel


def _build_fused_weights(layer_params, input_size):
    """Gate-type-major fused weights.

    Column layout of every fused operand: [ i | f | o | g ], each block L*H wide
    and layer-major inside.  Rows of the (L*H, 4*L*H) recurrent matrix are the
    layer-major previous-hidden slab: W_hh_l sits in row block l, W_ih_l (l>0)
    in row block l-1 (the previous layer's hidden is layer l's input on the
    wavefront).  W_ih_0 is scattered into its own (input, 4*L*H) matrix (zeros
    for the other layers' columns) so the hoisted x-projection lands directly
    in the fused layout."""
    L = len(layer_params)
    H = layer_params[0][1].shape[0]
    LH = L * H
    gate_perm = (0, 1, 3, 2)  # kernel block p <- torch gate index (i, f, g, o)

    wbig = np.zeros((LH, 4 * LH), np.float32)
    ball = np.zeros((1, 4 * LH), np.float32)
    wih0 = np.zeros((input_size, 4 * LH), np.float32)
    for l, (wih_t, whh_t, b) in enumerate(layer_params):
        wih_t = np.asarray(wih_t)
        whh_t = np.asarray(whh_t)
        b = np.asarray(b)
        for p, tg in enumerate(gate_perm):
            cols = slice(p * LH + l * H, p * LH + (l + 1) * H)
            src = slice(tg * H, (tg + 1) * H)
            wbig[l * H:(l + 1) * H, cols] = whh_t[:, src]
            ball[0, cols] = b[0, src]
            if l > 0:
                wbig[(l - 1) * H:l * H, cols] = wih_t[:, src]
            else:
                wih0[:, cols] = wih_t[:, src]
    return jnp.asarray(wbig), jnp.asarray(ball), jnp.asarray(wih0)


def stateful_lstm_forward(x, layer_params, head_w, head_b, state=None,
                          chunk_len=None):
    """One forward pass. Returns (y, (hn, cn)); the caller carries the state
    between calls (functional equivalent of StatefulLSTM.reset_state)."""
    seq_len, input_size = x.shape
    L = len(layer_params)
    H = layer_params[0][1].shape[0]
    LH = L * H
    out_dim = head_w.shape[1]

    if chunk_len is None:
        chunk_len = 32 if (seq_len > 32 and seq_len % 32 == 0) else seq_len
    assert seq_len % chunk_len == 0, "chunk_len must tile seq_len"
    n_chunks = seq_len // chunk_len
    assert n_chunks == 1 or chunk_len % 8 == 0, "chunked blocks need sublane-8"

    if state is None:
        h0 = jnp.zeros((1, LH), jnp.float32)
        c0 = jnp.zeros((1, LH), jnp.float32)
    else:
        h0 = jnp.asarray(state[0], jnp.float32).reshape(1, LH)
        c0 = jnp.asarray(state[1], jnp.float32).reshape(1, LH)

    wbig, ball, wih0 = _build_fused_weights(layer_params, input_size)
    kernel = _make_kernel(L, chunk_len, H)

    grid_spec = pltpu.PrefetchScalarGridSpec(
        num_scalar_prefetch=0,
        grid=(n_chunks,),
        in_specs=[
            pl.BlockSpec((chunk_len, input_size), lambda c: (c, 0)),   # x chunk
            pl.BlockSpec((input_size, 4 * LH), lambda c: (0, 0)),      # W_ih_0 (fused cols)
            pl.BlockSpec((LH, 4 * LH), lambda c: (0, 0)),              # fused recurrent W
            pl.BlockSpec((1, 4 * LH), lambda c: (0, 0)),               # fused bias
            pl.BlockSpec((H, out_dim), lambda c: (0, 0)),              # head W
            pl.BlockSpec((1, out_dim), lambda c: (0, 0)),              # head b
            pl.BlockSpec((1, LH), lambda c: (0, 0)),                   # h0 slab
            pl.BlockSpec((1, LH), lambda c: (0, 0)),                   # c0 slab
        ],
        out_specs=(
            pl.BlockSpec((chunk_len, out_dim), lambda c: (c, 0)),      # y chunk
            pl.BlockSpec((1, LH), lambda c: (0, 0)),                   # hn slab
            pl.BlockSpec((1, LH), lambda c: (0, 0)),                   # cn slab
        ),
        scratch_shapes=[pltpu.VMEM((1, LH), jnp.float32),              # h carry
                        pltpu.VMEM((1, LH), jnp.float32)],             # c carry
    )

    y, hn, cn = pl.pallas_call(
        kernel,
        out_shape=(
            jax.ShapeDtypeStruct((seq_len, out_dim), jnp.float32),
            jax.ShapeDtypeStruct((1, LH), jnp.float32),
            jax.ShapeDtypeStruct((1, LH), jnp.float32),
        ),
        grid_spec=grid_spec,
        compiler_params=pltpu.CompilerParams(
            dimension_semantics=("arbitrary",)),   # sequential: state carry
    )(x, wih0, wbig, ball, head_w, head_b, h0, c0)
    return y, (hn.reshape(L, H), cn.reshape(L, H))


def init_params(key, input_size, hidden, output_size, num_layers):
    """Deterministic init mimicking PyTorch's U(-1/sqrt(H), 1/sqrt(H))."""
    k = 1.0 / float(np.sqrt(hidden))
    layer_params = []
    for l in range(num_layers):
        in_dim = input_size if l == 0 else hidden
        key, k1, k2, k3, k4 = jax.random.split(key, 5)
        w_ih = jax.random.uniform(k1, (4 * hidden, in_dim), jnp.float32, -k, k)
        w_hh = jax.random.uniform(k2, (4 * hidden, hidden), jnp.float32, -k, k)
        b_ih = jax.random.uniform(k3, (4 * hidden,), jnp.float32, -k, k)
        b_hh = jax.random.uniform(k4, (4 * hidden,), jnp.float32, -k, k)
        layer_params.append(
            (w_ih.T, w_hh.T, (b_ih + b_hh).reshape(1, 4 * hidden)))
    key, k5, k6 = jax.random.split(key, 3)
    head_w = jax.random.uniform(k5, (output_size, hidden), jnp.float32, -k, k)
    head_b = jax.random.uniform(k6, (output_size,), jnp.float32, -k, k)
    return layer_params, head_w.T, head_b.reshape(1, output_size)


def reference_forward(x, layer_params, head_w, head_b, state=None):
    """Pure-JAX reference (same math, no Pallas) for verification."""
    num_layers = len(layer_params)
    hidden = layer_params[0][1].shape[0]
    if state is None:
        h = [jnp.zeros((hidden,), jnp.float32) for _ in range(num_layers)]
        c = [jnp.zeros((hidden,), jnp.float32) for _ in range(num_layers)]
    else:
        h = [state[0][l] for l in range(num_layers)]
        c = [state[1][l] for l in range(num_layers)]
    seq = x
    H = hidden
    for l, (wih, whh, b) in enumerate(layer_params):
        hl, cl = h[l], c[l]
        outs = []
        for t in range(seq.shape[0]):
            gates = seq[t] @ wih + hl @ whh + b[0]
            i = jax.nn.sigmoid(gates[0:H])
            f = jax.nn.sigmoid(gates[H:2 * H])
            g = jnp.tanh(gates[2 * H:3 * H])
            o = jax.nn.sigmoid(gates[3 * H:4 * H])
            cl = f * cl + i * g
            hl = o * jnp.tanh(cl)
            outs.append(hl)
        seq = jnp.stack(outs)
        h[l], c[l] = hl, cl
    y = jax.nn.sigmoid(seq @ head_w + head_b[0])
    return y, (jnp.stack(h), jnp.stack(c))


if __name__ == "__main__":
    input_size, hidden_size, output_size, num_layers = 16, 32, 8, 2
    seq_len = 8

    key = jax.random.PRNGKey(0)
    key, pk, xk, xk2 = jax.random.split(key, 4)
    layer_params, head_w, head_b = init_params(
        pk, input_size, hidden_size, output_size, num_layers)
    x = jax.random.normal(xk, (seq_len, input_size), jnp.float32)

    # First call: state is None (zeros), like a fresh StatefulLSTM.
    y, (hn, cn) = stateful_lstm_forward(x, layer_params, head_w, head_b, state=None)
    jax.block_until_ready((y, hn, cn))
    y_ref, (hn_ref, cn_ref) = reference_forward(x, layer_params, head_w, head_b)
    assert np.allclose(np.asarray(y), np.asarray(y_ref), atol=1e-4, rtol=1e-4)
    assert np.allclose(np.asarray(hn), np.asarray(hn_ref), atol=1e-4, rtol=1e-4)
    assert np.allclose(np.asarray(cn), np.asarray(cn_ref), atol=1e-4, rtol=1e-4)

    # Second call: carry (hn, cn) forward (the "stateful" part).
    y2, (hn2, cn2) = stateful_lstm_forward(
        x, layer_params, head_w, head_b, state=(hn, cn))
    jax.block_until_ready(y2)
    y2_ref, (hn2_ref, cn2_ref) = reference_forward(
        x, layer_params, head_w, head_b, state=(hn_ref, cn_ref))
    assert np.allclose(np.asarray(y2), np.asarray(y2_ref), atol=1e-4, rtol=1e-4)

    # Third call: longer sequence processed as 4 time chunks per pallas_call
    # (grid > 1, h/c carried across chunks in VMEM scratch).
    x_long = jax.random.normal(xk2, (32, input_size), jnp.float32)
    y3, (hn3, cn3) = stateful_lstm_forward(
        x_long, layer_params, head_w, head_b, state=(hn2, cn2), chunk_len=8)
    jax.block_until_ready(y3)
    y3_ref, (hn3_ref, cn3_ref) = reference_forward(
        x_long, layer_params, head_w, head_b, state=(hn2_ref, cn2_ref))
    assert np.allclose(np.asarray(y3), np.asarray(y3_ref), atol=2e-4, rtol=2e-4)
    assert np.allclose(np.asarray(hn3), np.asarray(hn3_ref), atol=2e-4, rtol=2e-4)
    assert np.allclose(np.asarray(cn3), np.asarray(cn3_ref), atol=2e-4, rtol=2e-4)

    # TODO(synk): predict() autoregressive loop (feeding the output back as the
    # next input; requires output_size == input_size in the original module) is
    # a host-level Python loop around forward(); kept at the wrapper level.
    print("KERNEL_OK")
</pallas_src>

<mosaic_0001>
module attributes {stable_mosaic.version = 11 : i64} {
  func.func @kernel(%arg0: i32, %arg1: memref<8x16xf32, #tpu.memory_space<vmem>>, %arg2: memref<16x256xf32, #tpu.memory_space<vmem>>, %arg3: memref<64x256xf32, #tpu.memory_space<vmem>>, %arg4: memref<1x256xf32, #tpu.memory_space<vmem>>, %arg5: memref<32x8xf32, #tpu.memory_space<vmem>>, %arg6: memref<1x8xf32, #tpu.memory_space<vmem>>, %arg7: memref<1x64xf32, #tpu.memory_space<vmem>>, %arg8: memref<1x64xf32, #tpu.memory_space<vmem>>, %arg9: memref<8x8xf32, #tpu.memory_space<vmem>>, %arg10: memref<1x64xf32, #tpu.memory_space<vmem>>, %arg11: memref<1x64xf32, #tpu.memory_space<vmem>>, %arg12: memref<1x64xf32, #tpu.memory_space<vmem>>, %arg13: memref<1x64xf32, #tpu.memory_space<vmem>>) attributes {dimension_semantics = [#tpu.dimension_semantics<arbitrary>], iteration_bounds = array<i64: 1>, scalar_prefetch = 0 : i64, scratch_operands = 2 : i64, tpu.core_type = #tpu.core_type<tc>, window_params = [{transform_indices = @transform_0, window_bounds = array<i64: 8, 16>}, {pipeline_mode = #tpu.pipeline_mode<synchronous>, transform_indices = @transform_1, window_bounds = array<i64: 16, 256>}, {pipeline_mode = #tpu.pipeline_mode<synchronous>, transform_indices = @transform_2, window_bounds = array<i64: 64, 256>}, {pipeline_mode = #tpu.pipeline_mode<synchronous>, transform_indices = @transform_3, window_bounds = array<i64: 1, 256>}, {pipeline_mode = #tpu.pipeline_mode<synchronous>, transform_indices = @transform_4, window_bounds = array<i64: 32, 8>}, {pipeline_mode = #tpu.pipeline_mode<synchronous>, transform_indices = @transform_5, window_bounds = array<i64: 1, 8>}, {pipeline_mode = #tpu.pipeline_mode<synchronous>, transform_indices = @transform_6, window_bounds = array<i64: 1, 64>}, {pipeline_mode = #tpu.pipeline_mode<synchronous>, transform_indices = @transform_7, window_bounds = array<i64: 1, 64>}, {transform_indices = @transform_8, window_bounds = array<i64: 8, 8>}, {pipeline_mode = #tpu.pipeline_mode<synchronous>, transform_indices = @transform_9, window_bounds = array<i64: 1, 64>}, {pipeline_mode = #tpu.pipeline_mode<synchronous>, transform_indices = @transform_10, window_bounds = array<i64: 1, 64>}]} {
    %c0_i32 = arith.constant 0 : i32
    %0 = arith.cmpi eq, %arg0, %c0_i32 : i32
    %1 = arith.extui %0 : i1 to i32
    %c0_i32_0 = arith.constant 0 : i32
    %2 = arith.cmpi ne, %1, %c0_i32_0 : i32
    scf.if %2 {
      %c0_68 = arith.constant 0 : index
      %c0_69 = arith.constant 0 : index
      %241 = vector.load %arg7[%c0_68, %c0_69] : memref<1x64xf32, #tpu.memory_space<vmem>>, vector<1x64xf32>
      %c0_70 = arith.constant 0 : index
      %c0_71 = arith.constant 0 : index
      %242 = vector.load %arg12[%c0_70, %c0_71] : memref<1x64xf32, #tpu.memory_space<vmem>>, vector<1x64xf32>
      tpu.vector_store %arg12[%c0_70, %c0_71], %241 {strides = array<i32>} : memref<1x64xf32, #tpu.memory_space<vmem>>, vector<1x64xf32>,
      %c0_72 = arith.constant 0 : index
      %c0_73 = arith.constant 0 : index
      %243 = vector.load %arg8[%c0_72, %c0_73] : memref<1x64xf32, #tpu.memory_space<vmem>>, vector<1x64xf32>
      %c0_74 = arith.constant 0 : index
      %c0_75 = arith.constant 0 : index
      %244 = vector.load %arg13[%c0_74, %c0_75] : memref<1x64xf32, #tpu.memory_space<vmem>>, vector<1x64xf32>
      tpu.vector_store %arg13[%c0_74, %c0_75], %243 {strides = array<i32>} : memref<1x64xf32, #tpu.memory_space<vmem>>, vector<1x64xf32>,
    } else {
    }
    %c0 = arith.constant 0 : index
    %c0_1 = arith.constant 0 : index
    %3 = vector.load %arg4[%c0, %c0_1] : memref<1x256xf32, #tpu.memory_space<vmem>>, vector<1x256xf32>
    %c0_2 = arith.constant 0 : index
    %c0_3 = arith.constant 0 : index
    %4 = vector.load %arg3[%c0_2, %c0_3] : memref<64x256xf32, #tpu.memory_space<vmem>>, vector<64x256xf32>
    %c0_4 = arith.constant 0 : index
    %c0_5 = arith.constant 0 : index
    %5 = vector.load %arg1[%c0_4, %c0_5] : memref<8x16xf32, #tpu.memory_space<vmem>>, vector<8x16xf32>
    %c0_6 = arith.constant 0 : index
    %c0_7 = arith.constant 0 : index
    %6 = vector.load %arg2[%c0_6, %c0_7] : memref<16x256xf32, #tpu.memory_space<vmem>>, vector<16x256xf32>
    %cst = arith.constant dense<0.000000e+00> : vector<8x256xf32>
    %7 = tpu.matmul %5, %6, %cst {dimension_numbers = #tpu.dot_dimension_numbers<[1], [0], [0], [1], [0, 0, 1, 1], [], []>} : vector<8x16xf32>, vector<16x256xf32>, vector<8x256xf32> -> vector<8x256xf32>
    %8 = vector.broadcast %3 : vector<1x256xf32> to vector<8x256xf32>
    %9 = arith.addf %7, %8 : vector<8x256xf32>
    %c0_8 = arith.constant 0 : index
    %c0_9 = arith.constant 0 : index
    %10 = vector.load %arg12[%c0_8, %c0_9] : memref<1x64xf32, #tpu.memory_space<vmem>>, vector<1x64xf32>
    %c0_10 = arith.constant 0 : index
    %c0_11 = arith.constant 0 : index
    %11 = vector.load %arg13[%c0_10, %c0_11] : memref<1x64xf32, #tpu.memory_space<vmem>>, vector<1x64xf32>
    %12 = tpu.iota {dimensions = array<i32: 1>} : vector<1x64xi32>
    %13 = vector.extract_strided_slice %9 {offsets = [0, 0], sizes = [1, 256], strides = [1, 1]} : vector<8x256xf32> to vector<1x256xf32>
    %cst_12 = arith.constant dense<0.000000e+00> : vector<1x256xf32>
    %14 = tpu.matmul %10, %4, %cst_12 {dimension_numbers = #tpu.dot_dimension_numbers<[1], [0], [0], [1], [0, 0, 1, 1], [], []>} : vector<1x64xf32>, vector<64x256xf32>, vector<1x256xf32> -> vector<1x256xf32>
    %15 = arith.addf %14, %13 : vector<1x256xf32>
    %16 = vector.extract_strided_slice %15 {offsets = [0, 0], sizes = [1, 192], strides = [1, 1]} : vector<1x256xf32> to vector<1x192xf32>
    %cst_13 = arith.constant 5.000000e-01 : f32
    %17 = vector.broadcast %cst_13 : f32 to vector<1x192xf32>
    %18 = arith.mulf %17, %16 : vector<1x192xf32>
    %19 = math.tanh %18 : vector<1x192xf32>
    %cst_14 = arith.constant 5.000000e-01 : f32
    %20 = vector.broadcast %cst_14 : f32 to vector<1x192xf32>
    %21 = arith.mulf %20, %19 : vector<1x192xf32>
    %cst_15 = arith.constant 5.000000e-01 : f32
    %22 = vector.broadcast %cst_15 : f32 to vector<1x192xf32>
    %23 = arith.addf %21, %22 : vector<1x192xf32>
    %24 = vector.extract_strided_slice %15 {offsets = [0, 192], sizes = [1, 64], strides = [1, 1]} : vector<1x256xf32> to vector<1x64xf32>
    %25 = math.tanh %24 : vector<1x64xf32>
    %26 = vector.extract_strided_slice %23 {offsets = [0, 0], sizes = [1, 64], strides = [1, 1]} : vector<1x192xf32> to vector<1x64xf32>
    %27 = vector.extract_strided_slice %23 {offsets = [0, 64], sizes = [1, 64], strides = [1, 1]} : vector<1x192xf32> to vector<1x64xf32>
    %28 = vector.extract_strided_slice %23 {offsets = [0, 128], sizes = [1, 64], strides = [1, 1]} : vector<1x192xf32> to vector<1x64xf32>
    %29 = arith.mulf %27, %11 : vector<1x64xf32>
    %30 = arith.mulf %26, %25 : vector<1x64xf32>
    %31 = arith.addf %29, %30 : vector<1x64xf32>
    %32 = math.tanh %31 : vector<1x64xf32>
    %33 = arith.mulf %28, %32 : vector<1x64xf32>
    %c0_i32_16 = arith.constant 0 : i32
    %34 = vector.broadcast %c0_i32_16 : i32 to vector<1x64xi32>
    %35 = arith.cmpi sge, %12, %34 : vector<1x64xi32>
    %c32_i32 = arith.constant 32 : i32
    %36 = vector.broadcast %c32_i32 : i32 to vector<1x64xi32>
    %37 = arith.cmpi slt, %12, %36 : vector<1x64xi32>
    %38 = arith.andi %35, %37 : vector<1x64xi1>
    %39 = arith.select %38, %31, %11 : vector<1x64xi1>, vector<1x64xf32>
    %40 = arith.select %38, %33, %10 : vector<1x64xi1>, vector<1x64xf32>
    %41 = vector.extract_strided_slice %9 {offsets = [1, 0], sizes = [1, 256], strides = [1, 1]} : vector<8x256xf32> to vector<1x256xf32>
    %cst_17 = arith.constant dense<0.000000e+00> : vector<1x256xf32>
    %42 = tpu.matmul %40, %4, %cst_17 {dimension_numbers = #tpu.dot_dimension_numbers<[1], [0], [0], [1], [0, 0, 1, 1], [], []>} : vector<1x64xf32>, vector<64x256xf32>, vector<1x256xf32> -> vector<1x256xf32>
    %43 = arith.addf %42, %41 : vector<1x256xf32>
    %44 = vector.extract_strided_slice %43 {offsets = [0, 0], sizes = [1, 192], strides = [1, 1]} : vector<1x256xf32> to vector<1x192xf32>
    %cst_18 = arith.constant 5.000000e-01 : f32
    %45 = vector.broadcast %cst_18 : f32 to vector<1x192xf32>
    %46 = arith.mulf %45, %44 : vector<1x192xf32>
    %47 = math.tanh %46 : vector<1x192xf32>
    %cst_19 = arith.constant 5.000000e-01 : f32
    %48 = vector.broadcast %cst_19 : f32 to vector<1x192xf32>
    %49 = arith.mulf %48, %47 : vector<1x192xf32>
    %cst_20 = arith.constant 5.000000e-01 : f32
    %50 = vector.broadcast %cst_20 : f32 to vector<1x192xf32>
    %51 = arith.addf %49, %50 : vector<1x192xf32>
    %52 = vector.extract_strided_slice %43 {offsets = [0, 192], sizes = [1, 64], strides = [1, 1]} : vector<1x256xf32> to vector<1x64xf32>
    %53 = math.tanh %52 : vector<1x64xf32>
    %54 = vector.extract_strided_slice %51 {offsets = [0, 0], sizes = [1, 64], strides = [1, 1]} : vector<1x192xf32> to vector<1x64xf32>
    %55 = vector.extract_strided_slice %51 {offsets = [0, 64], sizes = [1, 64], strides = [1, 1]} : vector<1x192xf32> to vector<1x64xf32>
    %56 = vector.extract_strided_slice %51 {offsets = [0, 128], sizes = [1, 64], strides = [1, 1]} : vector<1x192xf32> to vector<1x64xf32>
    %57 = arith.mulf %55, %39 : vector<1x64xf32>
    %58 = arith.mulf %54, %53 : vector<1x64xf32>
    %59 = arith.addf %57, %58 : vector<1x64xf32>
    %60 = math.tanh %59 : vector<1x64xf32>
    %61 = arith.mulf %56, %60 : vector<1x64xf32>
    %62 = vector.extract_strided_slice %61 {offsets = [0, 32], sizes = [1, 32], strides = [1, 1]} : vector<1x64xf32> to vector<1x32xf32>
    %63 = vector.extract_strided_slice %9 {offsets = [2, 0], sizes = [1, 256], strides = [1, 1]} : vector<8x256xf32> to vector<1x256xf32>
    %cst_21 = arith.constant dense<0.000000e+00> : vector<1x256xf32>
    %64 = tpu.matmul %61, %4, %cst_21 {dimension_numbers = #tpu.dot_dimension_numbers<[1], [0], [0], [1], [0, 0, 1, 1], [], []>} : vector<1x64xf32>, vector<64x256xf32>, vector<1x256xf32> -> vector<1x256xf32>
    %65 = arith.addf %64, %63 : vector<1x256xf32>
    %66 = vector.extract_strided_slice %65 {offsets = [0, 0], sizes = [1, 192], strides = [1, 1]} : vector<1x256xf32> to vector<1x192xf32>
    %cst_22 = arith.constant 5.000000e-01 : f32
    %67 = vector.broadcast %cst_22 : f32 to vector<1x192xf32>
    %68 = arith.mulf %67, %66 : vector<1x192xf32>
    %69 = math.tanh %68 : vector<1x192xf32>
    %cst_23 = arith.constant 5.000000e-01 : f32
    %70 = vector.broadcast %cst_23 : f32 to vector<1x192xf32>
    %71 = arith.mulf %70, %69 : vector<1x192xf32>
    %cst_24 = arith.constant 5.000000e-01 : f32
    %72 = vector.broadcast %cst_24 : f32 to vector<1x192xf32>
    %73 = arith.addf %71, %72 : vector<1x192xf32>
    %74 = vector.extract_strided_slice %65 {offsets = [0, 192], sizes = [1, 64], strides = [1, 1]} : vector<1x256xf32> to vector<1x64xf32>
    %75 = math.tanh %74 : vector<1x64xf32>
    %76 = vector.extract_strided_slice %73 {offsets = [0, 0], sizes = [1, 64], strides = [1, 1]} : vector<1x192xf32> to vector<1x64xf32>
    %77 = vector.extract_strided_slice %73 {offsets = [0, 64], sizes = [1, 64], strides = [1, 1]} : vector<1x192xf32> to vector<1x64xf32>
    %78 = vector.extract_strided_slice %73 {offsets = [0, 128], sizes = [1, 64], strides = [1, 1]} : vector<1x192xf32> to vector<1x64xf32>
    %79 = arith.mulf %77, %59 : vector<1x64xf32>
    %80 = arith.mulf %76, %75 : vector<1x64xf32>
    %81 = arith.addf %79, %80 : vector<1x64xf32>
    %82 = math.tanh %81 : vector<1x64xf32>
    %83 = arith.mulf %78, %82 : vector<1x64xf32>
    %84 = vector.extract_strided_slice %83 {offsets = [0, 32], sizes = [1, 32], strides = [1, 1]} : vector<1x64xf32> to vector<1x32xf32>
    %85 = vector.extract_strided_slice %9 {offsets = [3, 0], sizes = [1, 256], strides = [1, 1]} : vector<8x256xf32> to vector<1x256xf32>
    %cst_25 = arith.constant dense<0.000000e+00> : vector<1x256xf32>
    %86 = tpu.matmul %83, %4, %cst_25 {dimension_numbers = #tpu.dot_dimension_numbers<[1], [0], [0], [1], [0, 0, 1, 1], [], []>} : vector<1x64xf32>, vector<64x256xf32>, vector<1x256xf32> -> vector<1x256xf32>
    %87 = arith.addf %86, %85 : vector<1x256xf32>
    %88 = vector.extract_strided_slice %87 {offsets = [0, 0], sizes = [1, 192], strides = [1, 1]} : vector<1x256xf32> to vector<1x192xf32>
    %cst_26 = arith.constant 5.000000e-01 : f32
    %89 = vector.broadcast %cst_26 : f32 to vector<1x192xf32>
    %90 = arith.mulf %89, %88 : vector<1x192xf32>
    %91 = math.tanh %90 : vector<1x192xf32>
    %cst_27 = arith.constant 5.000000e-01 : f32
    %92 = vector.broadcast %cst_27 : f32 to vector<1x192xf32>
    %93 = arith.mulf %92, %91 : vector<1x192xf32>
    %cst_28 = arith.constant 5.000000e-01 : f32
    %94 = vector.broadcast %cst_28 : f32 to vector<1x192xf32>
    %95 = arith.addf %93, %94 : vector<1x192xf32>
    %96 = vector.extract_strided_slice %87 {offsets = [0, 192], sizes = [1, 64], strides = [1, 1]} : vector<1x256xf32> to vector<1x64xf32>
    %97 = math.tanh %96 : vector<1x64xf32>
    %98 = vector.extract_strided_slice %95 {offsets = [0, 0], sizes = [1, 64], strides = [1, 1]} : vector<1x192xf32> to vector<1x64xf32>
    %99 = vector.extract_strided_slice %95 {offsets = [0, 64], sizes = [1, 64], strides = [1, 1]} : vector<1x192xf32> to vector<1x64xf32>
    %100 = vector.extract_strided_slice %95 {offsets = [0, 128], sizes = [1, 64], strides = [1, 1]} : vector<1x192xf32> to vector<1x64xf32>
    %101 = arith.mulf %99, %81 : vector<1x64xf32>
    %102 = arith.mulf %98, %97 : vector<1x64xf32>
    %103 = arith.addf %101, %102 : vector<1x64xf32>
    %104 = math.tanh %103 : vector<1x64xf32>
    %105 = arith.mulf %100, %104 : vector<1x64xf32>
    %106 = vector.extract_strided_slice %105 {offsets = [0, 32], sizes = [1, 32], strides = [1, 1]} : vector<1x64xf32> to vector<1x32xf32>
    %107 = vector.extract_strided_slice %9 {offsets = [4, 0], sizes = [1, 256], strides = [1, 1]} : vector<8x256xf32> to vector<1x256xf32>
    %cst_29 = arith.constant dense<0.000000e+00> : vector<1x256xf32>
    %108 = tpu.matmul %105, %4, %cst_29 {dimension_numbers = #tpu.dot_dimension_numbers<[1], [0], [0], [1], [0, 0, 1, 1], [], []>} : vector<1x64xf32>, vector<64x256xf32>, vector<1x256xf32> -> vector<1x256xf32>
    %109 = arith.addf %108, %107 : vector<1x256xf32>
    %110 = vector.extract_strided_slice %109 {offsets = [0, 0], sizes = [1, 192], strides = [1, 1]} : vector<1x256xf32> to vector<1x192xf32>
    %cst_30 = arith.constant 5.000000e-01 : f32
    %111 = vector.broadcast %cst_30 : f32 to vector<1x192xf32>
    %112 = arith.mulf %111, %110 : vector<1x192xf32>
    %113 = math.tanh %112 : vector<1x192xf32>
    %cst_31 = arith.constant 5.000000e-01 : f32
    %114 = vector.broadcast %cst_31 : f32 to vector<1x192xf32>
    %115 = arith.mulf %114, %113 : vector<1x192xf32>
    %cst_32 = arith.constant 5.000000e-01 : f32
    %116 = vector.broadcast %cst_32 : f32 to vector<1x192xf32>
    %117 = arith.addf %115, %116 : vector<1x192xf32>
    %118 = vector.extract_strided_slice %109 {offsets = [0, 192], sizes = [1, 64], strides = [1, 1]} : vector<1x256xf32> to vector<1x64xf32>
    %119 = math.tanh %118 : vector<1x64xf32>
    %120 = vector.extract_strided_slice %117 {offsets = [0, 0], sizes = [1, 64], strides = [1, 1]} : vector<1x192xf32> to vector<1x64xf32>
    %121 = vector.extract_strided_slice %117 {offsets = [0, 64], sizes = [1, 64], strides = [1, 1]} : vector<1x192xf32> to vector<1x64xf32>
    %122 = vector.extract_strided_slice %117 {offsets = [0, 128], sizes = [1, 64], strides = [1, 1]} : vector<1x192xf32> to vector<1x64xf32>
    %123 = arith.mulf %121, %103 : vector<1x64xf32>
    %124 = arith.mulf %120, %119 : vector<1x64xf32>
    %125 = arith.addf %123, %124 : vector<1x64xf32>
    %126 = math.tanh %125 : vector<1x64xf32>
    %127 = arith.mulf %122, %126 : vector<1x64xf32>
    %128 = vector.extract_strided_slice %127 {offsets = [0, 32], sizes = [1, 32], strides = [1, 1]} : vector<1x64xf32> to vector<1x32xf32>
    %129 = vector.extract_strided_slice %9 {offsets = [5, 0], sizes = [1, 256], strides = [1, 1]} : vector<8x256xf32> to vector<1x256xf32>
    %cst_33 = arith.constant dense<0.000000e+00> : vector<1x256xf32>
    %130 = tpu.matmul %127, %4, %cst_33 {dimension_numbers = #tpu.dot_dimension_numbers<[1], [0], [0], [1], [0, 0, 1, 1], [], []>} : vector<1x64xf32>, vector<64x256xf32>, vector<1x256xf32> -> vector<1x256xf32>
    %131 = arith.addf %130, %129 : vector<1x256xf32>
    %132 = vector.extract_strided_slice %131 {offsets = [0, 0], sizes = [1, 192], strides = [1, 1]} : vector<1x256xf32> to vector<1x192xf32>
    %cst_34 = arith.constant 5.000000e-01 : f32
    %133 = vector.broadcast %cst_34 : f32 to vector<1x192xf32>
    %134 = arith.mulf %133, %132 : vector<1x192xf32>
    %135 = math.tanh %134 : vector<1x192xf32>
    %cst_35 = arith.constant 5.000000e-01 : f32
    %136 = vector.broadcast %cst_35 : f32 to vector<1x192xf32>
    %137 = arith.mulf %136, %135 : vector<1x192xf32>
    %cst_36 = arith.constant 5.000000e-01 : f32
    %138 = vector.broadcast %cst_36 : f32 to vector<1x192xf32>
    %139 = arith.addf %137, %138 : vector<1x192xf32>
    %140 = vector.extract_strided_slice %131 {offsets = [0, 192], sizes = [1, 64], strides = [1, 1]} : vector<1x256xf32> to vector<1x64xf32>
    %141 = math.tanh %140 : vector<1x64xf32>
    %142 = vector.extract_strided_slice %139 {offsets = [0, 0], sizes = [1, 64], strides = [1, 1]} : vector<1x192xf32> to vector<1x64xf32>
    %143 = vector.extract_strided_slice %139 {offsets = [0, 64], sizes = [1, 64], strides = [1, 1]} : vector<1x192xf32> to vector<1x64xf32>
    %144 = vector.extract_strided_slice %139 {offsets = [0, 128], sizes = [1, 64], strides = [1, 1]} : vector<1x192xf32> to vector<1x64xf32>
    %145 = arith.mulf %143, %125 : vector<1x64xf32>
    %146 = arith.mulf %142, %141 : vector<1x64xf32>
    %147 = arith.addf %145, %146 : vector<1x64xf32>
    %148 = math.tanh %147 : vector<1x64xf32>
    %149 = arith.mulf %144, %148 : vector<1x64xf32>
    %150 = vector.extract_strided_slice %149 {offsets = [0, 32], sizes = [1, 32], strides = [1, 1]} : vector<1x64xf32> to vector<1x32xf32>
    %151 = vector.extract_strided_slice %9 {offsets = [6, 0], sizes = [1, 256], strides = [1, 1]} : vector<8x256xf32> to vector<1x256xf32>
    %cst_37 = arith.constant dense<0.000000e+00> : vector<1x256xf32>
    %152 = tpu.matmul %149, %4, %cst_37 {dimension_numbers = #tpu.dot_dimension_numbers<[1], [0], [0], [1], [0, 0, 1, 1], [], []>} : vector<1x64xf32>, vector<64x256xf32>, vector<1x256xf32> -> vector<1x256xf32>
    %153 = arith.addf %152, %151 : vector<1x256xf32>
    %154 = vector.extract_strided_slice %153 {offsets = [0, 0], sizes = [1, 192], strides = [1, 1]} : vector<1x256xf32> to vector<1x192xf32>
    %cst_38 = arith.constant 5.000000e-01 : f32
    %155 = vector.broadcast %cst_38 : f32 to vector<1x192xf32>
    %156 = arith.mulf %155, %154 : vector<1x192xf32>
    %157 = math.tanh %156 : vector<1x192xf32>
    %cst_39 = arith.constant 5.000000e-01 : f32
    %158 = vector.broadcast %cst_39 : f32 to vector<1x192xf32>
    %159 = arith.mulf %158, %157 : vector<1x192xf32>
    %cst_40 = arith.constant 5.000000e-01 : f32
    %160 = vector.broadcast %cst_40 : f32 to vector<1x192xf32>
    %161 = arith.addf %159, %160 : vector<1x192xf32>
    %162 = vector.extract_strided_slice %153 {offsets = [0, 192], sizes = [1, 64], strides = [1, 1]} : vector<1x256xf32> to vector<1x64xf32>
    %163 = math.tanh %162 : vector<1x64xf32>
    %164 = vector.extract_strided_slice %161 {offsets = [0, 0], sizes = [1, 64], strides = [1, 1]} : vector<1x192xf32> to vector<1x64xf32>
    %165 = vector.extract_strided_slice %161 {offsets = [0, 64], sizes = [1, 64], strides = [1, 1]} : vector<1x192xf32> to vector<1x64xf32>
    %166 = vector.extract_strided_slice %161 {offsets = [0, 128], sizes = [1, 64], strides = [1, 1]} : vector<1x192xf32> to vector<1x64xf32>
    %167 = arith.mulf %165, %147 : vector<1x64xf32>
    %168 = arith.mulf %164, %163 : vector<1x64xf32>
    %169 = arith.addf %167, %168 : vector<1x64xf32>
    %170 = math.tanh %169 : vector<1x64xf32>
    %171 = arith.mulf %166, %170 : vector<1x64xf32>
    %172 = vector.extract_strided_slice %171 {offsets = [0, 32], sizes = [1, 32], strides = [1, 1]} : vector<1x64xf32> to vector<1x32xf32>
    %173 = vector.extract_strided_slice %9 {offsets = [7, 0], sizes = [1, 256], strides = [1, 1]} : vector<8x256xf32> to vector<1x256xf32>
    %cst_41 = arith.constant dense<0.000000e+00> : vector<1x256xf32>
    %174 = tpu.matmul %171, %4, %cst_41 {dimension_numbers = #tpu.dot_dimension_numbers<[1], [0], [0], [1], [0, 0, 1, 1], [], []>} : vector<1x64xf32>, vector<64x256xf32>, vector<1x256xf32> -> vector<1x256xf32>
    %175 = arith.addf %174, %173 : vector<1x256xf32>
    %176 = vector.extract_strided_slice %175 {offsets = [0, 0], sizes = [1, 192], strides = [1, 1]} : vector<1x256xf32> to vector<1x192xf32>
    %cst_42 = arith.constant 5.000000e-01 : f32
    %177 = vector.broadcast %cst_42 : f32 to vector<1x192xf32>
    %178 = arith.mulf %177, %176 : vector<1x192xf32>
    %179 = math.tanh %178 : vector<1x192xf32>
    %cst_43 = arith.constant 5.000000e-01 : f32
    %180 = vector.broadcast %cst_43 : f32 to vector<1x192xf32>
    %181 = arith.mulf %180, %179 : vector<1x192xf32>
    %cst_44 = arith.constant 5.000000e-01 : f32
    %182 = vector.broadcast %cst_44 : f32 to vector<1x192xf32>
    %183 = arith.addf %181, %182 : vector<1x192xf32>
    %184 = vector.extract_strided_slice %175 {offsets = [0, 192], sizes = [1, 64], strides = [1, 1]} : vector<1x256xf32> to vector<1x64xf32>
    %185 = math.tanh %184 : vector<1x64xf32>
    %186 = vector.extract_strided_slice %183 {offsets = [0, 0], sizes = [1, 64], strides = [1, 1]} : vector<1x192xf32> to vector<1x64xf32>
    %187 = vector.extract_strided_slice %183 {offsets = [0, 64], sizes = [1, 64], strides = [1, 1]} : vector<1x192xf32> to vector<1x64xf32>
    %188 = vector.extract_strided_slice %183 {offsets = [0, 128], sizes = [1, 64], strides = [1, 1]} : vector<1x192xf32> to vector<1x64xf32>
    %189 = arith.mulf %187, %169 : vector<1x64xf32>
    %190 = arith.mulf %186, %185 : vector<1x64xf32>
    %191 = arith.addf %189, %190 : vector<1x64xf32>
    %192 = math.tanh %191 : vector<1x64xf32>
    %193 = arith.mulf %188, %192 : vector<1x64xf32>
    %194 = vector.extract_strided_slice %193 {offsets = [0, 32], sizes = [1, 32], strides = [1, 1]} : vector<1x64xf32> to vector<1x32xf32>
    %cst_45 = arith.constant dense<0.000000e+00> : vector<1x256xf32>
    %195 = tpu.matmul %193, %4, %cst_45 {dimension_numbers = #tpu.dot_dimension_numbers<[1], [0], [0], [1], [0, 0, 1, 1], [], []>} : vector<1x64xf32>, vector<64x256xf32>, vector<1x256xf32> -> vector<1x256xf32>
    %196 = arith.addf %195, %3 : vector<1x256xf32>
    %197 = vector.extract_strided_slice %196 {offsets = [0, 0], sizes = [1, 192], strides = [1, 1]} : vector<1x256xf32> to vector<1x192xf32>
    %cst_46 = arith.constant 5.000000e-01 : f32
    %198 = vector.broadcast %cst_46 : f32 to vector<1x192xf32>
    %199 = arith.mulf %198, %197 : vector<1x192xf32>
    %200 = math.tanh %199 : vector<1x192xf32>
    %cst_47 = arith.constant 5.000000e-01 : f32
    %201 = vector.broadcast %cst_47 : f32 to vector<1x192xf32>
    %202 = arith.mulf %201, %200 : vector<1x192xf32>
    %cst_48 = arith.constant 5.000000e-01 : f32
    %203 = vector.broadcast %cst_48 : f32 to vector<1x192xf32>
    %204 = arith.addf %202, %203 : vector<1x192xf32>
    %205 = vector.extract_strided_slice %196 {offsets = [0, 192], sizes = [1, 64], strides = [1, 1]} : vector<1x256xf32> to vector<1x64xf32>
    %206 = math.tanh %205 : vector<1x64xf32>
    %207 = vector.extract_strided_slice %204 {offsets = [0, 0], sizes = [1, 64], strides = [1, 1]} : vector<1x192xf32> to vector<1x64xf32>
    %208 = vector.extract_strided_slice %204 {offsets = [0, 64], sizes = [1, 64], strides = [1, 1]} : vector<1x192xf32> to vector<1x64xf32>
    %209 = vector.extract_strided_slice %204 {offsets = [0, 128], sizes = [1, 64], strides = [1, 1]} : vector<1x192xf32> to vector<1x64xf32>
    %210 = arith.mulf %208, %191 : vector<1x64xf32>
    %211 = arith.mulf %207, %206 : vector<1x64xf32>
    %212 = arith.addf %210, %211 : vector<1x64xf32>
    %213 = math.tanh %212 : vector<1x64xf32>
    %214 = arith.mulf %209, %213 : vector<1x64xf32>
    %c32_i32_49 = arith.constant 32 : i32
    %215 = vector.broadcast %c32_i32_49 : i32 to vector<1x64xi32>
    %216 = arith.cmpi sge, %12, %215 : vector<1x64xi32>
    %c64_i32 = arith.constant 64 : i32
    %217 = vector.broadcast %c64_i32 : i32 to vector<1x64xi32>
    %218 = arith.cmpi slt, %12, %217 : vector<1x64xi32>
    %219 = arith.andi %216, %218 : vector<1x64xi1>
    %220 = arith.select %219, %212, %191 : vector<1x64xi1>, vector<1x64xf32>
    %221 = arith.select %219, %214, %193 : vector<1x64xi1>, vector<1x64xf32>
    %222 = vector.extract_strided_slice %221 {offsets = [0, 32], sizes = [1, 32], strides = [1, 1]} : vector<1x64xf32> to vector<1x32xf32>
    %223 = tpu.concatenate %62, %84, %106, %128, %150, %172, %194, %222 in 0 : vector<1x32xf32>, vector<1x32xf32>, vector<1x32xf32>, vector<1x32xf32>, vector<1x32xf32>, vector<1x32xf32>, vector<1x32xf32>, vector<1x32xf32> -> vector<8x32xf32>
    %c0_50 = arith.constant 0 : index
    %c0_51 = arith.constant 0 : index
    %224 = vector.load %arg5[%c0_50, %c0_51] : memref<32x8xf32, #tpu.memory_space<vmem>>, vector<32x8xf32>
    %cst_52 = arith.constant dense<0.000000e+00> : vector<8x8xf32>
    %225 = tpu.matmul %223, %224, %cst_52 {dimension_numbers = #tpu.dot_dimension_numbers<[1], [0], [0], [1], [0, 0, 1, 1], [], []>} : vector<8x32xf32>, vector<32x8xf32>, vector<8x8xf32> -> vector<8x8xf32>
    %c0_53 = arith.constant 0 : index
    %c0_54 = arith.constant 0 : index
    %226 = vector.load %arg6[%c0_53, %c0_54] : memref<1x8xf32, #tpu.memory_space<vmem>>, vector<1x8xf32>
    %227 = vector.broadcast %226 : vector<1x8xf32> to vector<8x8xf32>
    %228 = arith.addf %225, %227 : vector<8x8xf32>
    %cst_55 = arith.constant 5.000000e-01 : f32
    %229 = vector.broadcast %cst_55 : f32 to vector<8x8xf32>
    %230 = arith.mulf %229, %228 : vector<8x8xf32>
    %231 = math.tanh %230 : vector<8x8xf32>
    %cst_56 = arith.constant 5.000000e-01 : f32
    %232 = vector.broadcast %cst_56 : f32 to vector<8x8xf32>
    %233 = arith.mulf %232, %231 : vector<8x8xf32>
    %cst_57 = arith.constant 5.000000e-01 : f32
    %234 = vector.broadcast %cst_57 : f32 to vector<8x8xf32>
    %235 = arith.addf %233, %234 : vector<8x8xf32>
    %c0_58 = arith.constant 0 : index
    %c0_59 = arith.constant 0 : index
    %236 = vector.load %arg9[%c0_58, %c0_59] : memref<8x8xf32, #tpu.memory_space<vmem>>, vector<8x8xf32>
    tpu.vector_store %arg9[%c0_58, %c0_59], %235 {strides = array<i32>} : memref<8x8xf32, #tpu.memory_space<vmem>>, vector<8x8xf32>,
    %c0_60 = arith.constant 0 : index
    %c0_61 = arith.constant 0 : index
    %237 = vector.load %arg12[%c0_60, %c0_61] : memref<1x64xf32, #tpu.memory_space<vmem>>, vector<1x64xf32>
    tpu.vector_store %arg12[%c0_60, %c0_61], %221 {strides = array<i32>} : memref<1x64xf32, #tpu.memory_space<vmem>>, vector<1x64xf32>,
    %c0_62 = arith.constant 0 : index
    %c0_63 = arith.constant 0 : index
    %238 = vector.load %arg13[%c0_62, %c0_63] : memref<1x64xf32, #tpu.memory_space<vmem>>, vector<1x64xf32>
    tpu.vector_store %arg13[%c0_62, %c0_63], %220 {strides = array<i32>} : memref<1x64xf32, #tpu.memory_space<vmem>>, vector<1x64xf32>,
    %c0_64 = arith.constant 0 : index
    %c0_65 = arith.constant 0 : index
    %239 = vector.load %arg10[%c0_64, %c0_65] : memref<1x64xf32, #tpu.memory_space<vmem>>, vector<1x64xf32>
    tpu.vector_store %arg10[%c0_64, %c0_65], %221 {strides = array<i32>} : memref<1x64xf32, #tpu.memory_space<vmem>>, vector<1x64xf32>,
    %c0_66 = arith.constant 0 : index
    %c0_67 = arith.constant 0 : index
    %240 = vector.load %arg11[%c0_66, %c0_67] : memref<1x64xf32, #tpu.memory_space<vmem>>, vector<1x64xf32>
    tpu.vector_store %arg11[%c0_66, %c0_67], %220 {strides = array<i32>} : memref<1x64xf32, #tpu.memory_space<vmem>>, vector<1x64xf32>,
    return
  }
  func.func @transform_0(%arg0: i32) -> (i32, i32) {
    %c0_i32 = arith.constant 0 : i32
    %c0_i32_0 = arith.constant 0 : i32
    return %arg0, %c0_i32 : i32, i32
  }
  func.func @transform_1(%arg0: i32) -> (i32, i32) {
    %c0_i32 = arith.constant 0 : i32
    %c0_i32_0 = arith.constant 0 : i32
    %c0_i32_1 = arith.constant 0 : i32
    return %c0_i32, %c0_i32_0 : i32, i32
  }
  func.func @transform_2(%arg0: i32) -> (i32, i32) {
    %c0_i32 = arith.constant 0 : i32
    %c0_i32_0 = arith.constant 0 : i32
    %c0_i32_1 = arith.constant 0 : i32
    return %c0_i32, %c0_i32_0 : i32, i32
  }
  func.func @transform_3(%arg0: i32) -> (i32, i32) {
    %c0_i32 = arith.constant 0 : i32
    %c0_i32_0 = arith.constant 0 : i32
    %c0_i32_1 = arith.constant 0 : i32
    return %c0_i32, %c0_i32_0 : i32, i32
  }
  func.func @transform_4(%arg0: i32) -> (i32, i32) {
    %c0_i32 = arith.constant 0 : i32
    %c0_i32_0 = arith.constant 0 : i32
    %c0_i32_1 = arith.constant 0 : i32
    return %c0_i32, %c0_i32_0 : i32, i32
  }
  func.func @transform_5(%arg0: i32) -> (i32, i32) {
    %c0_i32 = arith.constant 0 : i32
    %c0_i32_0 = arith.constant 0 : i32
    %c0_i32_1 = arith.constant 0 : i32
    return %c0_i32, %c0_i32_0 : i32, i32
  }
  func.func @transform_6(%arg0: i32) -> (i32, i32) {
    %c0_i32 = arith.constant 0 : i32
    %c0_i32_0 = arith.constant 0 : i32
    %c0_i32_1 = arith.constant 0 : i32
    return %c0_i32, %c0_i32_0 : i32, i32
  }
  func.func @transform_7(%arg0: i32) -> (i32, i32) {
    %c0_i32 = arith.constant 0 : i32
    %c0_i32_0 = arith.constant 0 : i32
    %c0_i32_1 = arith.constant 0 : i32
    return %c0_i32, %c0_i32_0 : i32, i32
  }
  func.func @transform_8(%arg0: i32) -> (i32, i32) {
    %c0_i32 = arith.constant 0 : i32
    %c0_i32_0 = arith.constant 0 : i32
    return %arg0, %c0_i32 : i32, i32
  }
  func.func @transform_9(%arg0: i32) -> (i32, i32) {
    %c0_i32 = arith.constant 0 : i32
    %c0_i32_0 = arith.constant 0 : i32
    %c0_i32_1 = arith.constant 0 : i32
    return %c0_i32, %c0_i32_0 : i32, i32
  }
  func.func @transform_10(%arg0: i32) -> (i32, i32) {
    %c0_i32 = arith.constant 0 : i32
    %c0_i32_0 = arith.constant 0 : i32
    %c0_i32_1 = arith.constant 0 : i32
    return %c0_i32, %c0_i32_0 : i32, i32
  }
}

</mosaic_0001>

<bundles_post_ra>
// kernel: tpu_custom_call.1
= control target key start
LH: loop header
LB: loop body
LE: loop exit
PB: predicated region body
PF: predicated region fallthrough
CT: control target
= control target key end

     0   :  { %16 = vsyncpa [#allocation5], 0  ;;  %s2020_s0 = inlined_call_operand.vmem [shape: f32[8,16], index: 0, kind: input, shape index: {}]   ;;  %s2021_s1 = inlined_call_operand.vmem [shape: f32[16,256], index: 1, kind: input, shape index: {}]   ;;  %s2022_s2 = inlined_call_operand.hbm [shape: f32[64,256], index: 2, kind: input, shape index: {}]   ;;  %s2023_s3 = inlined_call_operand.vmem [shape: f32[1,256], index: 3, kind: input, shape index: {}]   ;;  %s2024_s4 = inlined_call_operand.vmem [shape: f32[32,8], index: 4, kind: input, shape index: {}]   ;;  %s2025_s5 = inlined_call_operand.vmem [shape: f32[1,8], index: 5, kind: input, shape index: {}]   ;;  %s2026_s6 = inlined_call_operand.vmem [shape: f32[1,64], index: 6, kind: input, shape index: {}]   ;;  %s2027_s7 = inlined_call_operand.vmem [shape: f32[1,64], index: 7, kind: input, shape index: {}]   ;;  %s2028_s8 = inlined_call_operand.hbm [shape: f32[8,8], index: 8, kind: output, shape index: {0}]   ;;  %s2029_s9 = inlined_call_operand.hbm [shape: f32[1,64], index: 9, kind: output, shape index: {1}]   ;;  %s2030_s10 = inlined_call_operand.hbm [shape: f32[1,64], index: 10, kind: output, shape index: {2}]  }
   0x1   :  { %17 = vsyncpa [#allocation6], 0 }
   0x2   :  { %18 = vsyncpa [#allocation9], 0  ;;  %s1664_s13 = smov [#allocation4]   ;;  %s1570_s17 = scalar_lea.hbm %s2022_s2, 2048 }
   0x3   :  { %s28_s14 = sshll.u32 %s1664_s13, 4  ;;  %p1571_p0 = scmp.ne.s32.totalorder %s2022_s2, %s1570_s17  ;;  %s29_s14 = int_to_ptr.vmem [resolvable:$true] %s28_s14 }
   0x4   :  { %p1574_p1 = scmp.lt.u32.totalorder %s1570_s17, %s2022_s2 }
   0x6   :  { %p1576_p2 = pnand %p1574_p1, %p1571_p0 }
   0x8   :  { %1579 = shalt.err (!%p1576_p2)
}
   0x9   :  { %s1580_s22 = scalar_lea.vmem %s29_s14, 2048  ;;  %p1585_p4 = scmp.lt.s32.totalorder %s29_s14, %s29_s14 }
   0xa   :  { %p1581_p3 = scmp.ne.s32.totalorder %s29_s14, %s1580_s22  ;;  %p1586_p5 = scmp.lt.s32.totalorder %s1580_s22, %s1580_s22 }
   0xc   :  { %p1587_p6 = por %p1586_p5, %p1585_p4 }
   0xe   :  { %p1588_p7 = pnand %p1587_p6, %p1581_p3 }
  0x10   :  { %1591 = shalt.err (!%p1588_p7)
}
  0x11   :  { %s1665_s23 = smov 256   ;;  %s1666_s24 = smov 16  }
  0x12   :  { %34 = dma.hbm_to_vmem [thread:$0]  %s2022_s2, 2048, %s29_s14, [#allocation5], %s1665_s23, %s1665_s23, %s1666_s24  }
  0x13   :  { %1658 = dma.done.wait [#allocation5], 2048  }
  0x14   :  { %1659 = vsyncadd [#allocation5], 4294965248  ;;  %v1667_v0 = vmov 0.0   ;;  %v59_v1 = vld [vmem:[#allocation4 + $0x8] sm:$0xff]  ;;  %v61_v2 = vld [vmem:[#allocation4 + $0x18] sm:$0xff]  ;;  %vm53_vm0 = vcmask 516096   ;;  %v80_v35 = vlaneseq }
  0x15   :  { %158 = vmatprep.mubr.f32.mxu0 %v1667_v0  ;;  %237 = vmatprep.mubr.f32.mxu1 %v1667_v0  ;;  %v58_v3 = vld [vmem:[#allocation4] sm:$0xff]  ;;  %v1744_v4 = vpack.c.bf16 %v61_v2, %v59_v1  ;;  %v60_v5 = vld [vmem:[#allocation4 + $0x10] sm:$0xff]  ;;  %v63_v6 = vld [vmem:[#allocation4 + $0x28] sm:$0xff]  ;;  %vm90_vm1 = vcmask 130048   ;;  %vm169_vm2 = vcmask 523264   ;;  %vm1149_vm4 = vcmask 1040384  }
  0x16   :  { %v65_v7 = vld [vmem:[#allocation4 + $0x38] sm:$0xff]  ;;  %v1746_v8 = vpack.c.bf16 %v60_v5, %v58_v3  ;;  %v62_v10 = vld [vmem:[#allocation4 + $0x20] sm:$0xff]  ;;  %v64_v11 = vld [vmem:[#allocation4 + $0x30] sm:$0xff]  ;;  %v81_v36 = vshrl.u32 %v80_v35, 7  ;;  %v1835_v2 = vand.u32 127, %v80_v35  ;;  %vm1151_vm5 = vcmask 1041408  }
  0x17   :  { %v1748_v9 = vpack.c.bf16 %v65_v7, %v63_v6  ;;  %v67_v12 = vld [vmem:[#allocation4 + $0x48] sm:$0xff]  ;;  %1336 = vmatprep.subr.bf16.mxu1 %v1744_v4  ;;  %v69_v13 = vld [vmem:[#allocation4 + $0x58] sm:$0xff]  ;;  %v1758_v16 = vpack.c.bf16 %v64_v11, %v62_v10  ;;  %v66_v20 = vld [vmem:[#allocation4 + $0x40] sm:$0xff]  ;;  %vm1153_vm6 = vcmask 1042432   ;;  %vm1155_vm7 = vcmask 1043456   ;;  %s1672_s26 = smov [#allocation8]  }
  0x18   :  { %v76_v14 = vld [vmem:[%s2021_s1 + $0x8] sm:$0xff]  ;;  %v78_v15 = vld [vmem:[%s2021_s1 + $0x18] sm:$0xff]  ;;  %1338 = vmatpush1.bf16.msra.mxu1 %v1746_v8  ;;  %v75_v18 = vld [vmem:[%s2021_s1] sm:$0xff]  ;;  %v1764_v19 = vpack.c.bf16 %v69_v13, %v67_v12  ;;  %v82_v37 = vsub.s32 0, %v81_v36  ;;  %v86_v39 = vsub.s32 1, %v81_v36  ;;  %vm279_vm3 = vcmp.lt.s32.totalorder %v1835_v2, 32 }
  0x19   :  { %v1331_v17 = vpack.c.bf16 %v78_v15, %v76_v14  ;;  %1340 = vmatprep.subr.bf16.mxu1 %v1748_v9  ;;  %v68_v21 = vld [vmem:[#allocation4 + $0x50] sm:$0xff]  ;;  %v71_v24 = vld [vmem:[#allocation4 + $0x68] sm:$0xff]  ;;  %v73_v25 = vld [vmem:[#allocation4 + $0x78] sm:$0xff]  ;;  %vm1157_vm8 = vcmask 1044480   ;;  %vm1670_vm9 = vmmov 0   ;;  %vm1121_vm10 = vcmp.ge.s32.totalorder %v1835_v2, 32 }
  0x1a   :  { %v77_v22 = vld [vmem:[%s2021_s1 + $0x10] sm:$0xff]  ;;  %v52_v26 = vld [vmem:[%s2026_s6] sm:$0x1]  ;;  %v1773_v27 = vpack.c.bf16 %v68_v21, %v66_v20  ;;  %v1780_v29 = vpack.c.bf16 %v73_v25, %v71_v24  ;;  %v70_v30 = vld [vmem:[#allocation4 + $0x60] sm:$0xff]  ;;  %vm1122_vm11 = vcmp.lt.s32.totalorder %v1835_v2, 64  ;;  %vm1159_vm13 = vcmask 1045504  }
  0x1b   :  { %1332 = vmatprep.subr.bf16.mxu0 %v1331_v17  ;;  %v1333_v23 = vpack.c.bf16 %v77_v22, %v75_v18  ;;  %v74_v28 = vld [vmem:[%s2020_s0] sm:$0xff]  ;;  %54 = vst.msk [vmem:[#allocation2] sm:$0x1] %vm53_vm0, %v52_v26  ;;  %v72_v31 = vld [vmem:[#allocation4 + $0x70] sm:$0xff]  ;;  %vm1966_vm12 = vmand %vm1121_vm10, %vm1122_vm11  ;;  %vm1161_vm14 = vcmask 1046528   ;;  %vm1177_vm15 = vcmask 261120  }
  0x1c   :  { %1342 = vmatpush1.bf16.msra.mxu1 %v1758_v16  ;;  %v1784_v32 = vpack.c.bf16 %v72_v31, %v70_v30  ;;  %v55_v34 = vld [vmem:[%s2027_s7] sm:$0x1]  ;;  %s1277_s2 = sshll.u32 %s1672_s26, 4  ;;  %s1278_s2 = int_to_ptr.vmem [resolvable:$true] %s1277_s2 }
  0x1d   :  { %1334 = vmatpush1.bf16.msra.mxu0 %v1333_v23  ;;  %1344 = vmatprep.subr.bf16.mxu1 %v1764_v19  ;;  %56 = vst.msk [vmem:[#allocation3] sm:$0x1] %vm53_vm0, %v55_v34  ;;  %v57_v38 = vld [vmem:[%s2023_s3] sm:$0x3]  ;;  %s1668_s3 = smov 64   ;;  %s1592_s27 = scalar_lea.vmem %s1278_s2, 16 }
  0x1e   :  { %1352 = vmatprep.subr.bf16.mxu0 %v1744_v4  ;;  %v1818_v41 = vrot.slane %v57_v38, %v82_v37  ;;  %v1820_v43 = vrot.slane %v57_v38, %v86_v39  ;;  %p1593_p8 = scmp.ne.s32.totalorder %s1278_s2, %s1592_s27  ;;  %s1596_s28 = scalar_lea.vmem %s1278_s2, 32 }
  0x1f   :  { %p1597_p9 = scmp.lt.s32.totalorder %s1278_s2, %s1278_s2  ;;  %p1598_p10 = scmp.lt.s32.totalorder %s1596_s28, %s1592_s27 }
  0x20   :  { %1303 = vmatmul.mubr.msk.f32.vlgmr.msra.gmra.mrb[0].mxu0 %vm90_vm1, %v74_v28  ;;  %1346 = vmatpush1.bf16.msra.mxu1 %v1773_v27 }
  0x21   :  { %1354 = vmatpush1.bf16.msra.mxu0 %v1746_v8  ;;  %1348 = vmatprep.subr.bf16.mxu1 %v1780_v29  ;;  %p1599_p11 = por %p1598_p10, %p1597_p9 }
  0x22   :  { %1356 = vmatprep.subr.bf16.mxu0 %v1748_v9  ;;  %360 = vmatprep.mubr.f32.mxu0 %v1667_v0  ;;  %v1791_v33 = vld [vmem:[#allocation2] sm:$0x1] }
  0x23   :  { %p1600_p12 = pnand %p1599_p11, %p1593_p8 }
  0x24   :  { %1350 = vmatpush1.bf16.msra.mxu1 %v1784_v32  ;;  %v166_v50 = vld [vmem:[#allocation3] sm:$0x1] }
  0x25   :  { %1358 = vmatpush1.bf16.msra.mxu0 %v1758_v16  ;;  %1368 = vmatprep.subr.bf16.mxu1 %v1744_v4  ;;  %v257_v52 = vrot.slane %v166_v50, %v82_v37 }
  0x26   :  { %1360 = vmatprep.subr.bf16.mxu0 %v1764_v19 }
  0x27   :  { %1304 = vmatmul.mubr.msk.f32.vlgmr.msra.gmra.mrb[0].mxu1 %vm169_vm2, %v1791_v33 }
  0x28   :  { %1370 = vmatpush1.bf16.msra.mxu1 %v1746_v8  ;;  %468 = vmatprep.mubr.f32.mxu1 %v1667_v0 }
  0x29   :  { %1362 = vmatpush1.bf16.msra.mxu0 %v1773_v27  ;;  %1372 = vmatprep.subr.bf16.mxu1 %v1748_v9 }
  0x2a   :  { %1364 = vmatprep.subr.bf16.mxu0 %v1780_v29 }
  0x2c   :  { %1374 = vmatpush1.bf16.msra.mxu1 %v1758_v16 }
  0x2d   :  { %1366 = vmatpush1.bf16.msra.mxu0 %v1784_v32  ;;  %1376 = vmatprep.subr.bf16.mxu1 %v1764_v19 }
  0x2e   :  { %1384 = vmatprep.subr.bf16.mxu0 %v1744_v4 }
  0x30   :  { %1378 = vmatpush1.bf16.msra.mxu1 %v1773_v27 }
  0x31   :  { %1380 = vmatprep.subr.bf16.mxu1 %v1780_v29 }
  0x34   :  { %1382 = vmatpush1.bf16.msra.mxu1 %v1784_v32 }
  0x35   :  { %1400 = vmatprep.subr.bf16.mxu1 %v1744_v4 }
  0xf3   :  { %v160_v40 = vpop.f32.mrb[0].mxu0 }
  0xf4   :  { %v162_v42 = vpop.f32.mrb[1].mxu0  ;;  %v1823_v44 = vadd.f32 %v160_v40, %v1818_v41 }
  0xf5   :  { %v1826_v45 = vadd.f32 %v162_v42, %v1820_v43 }
  0xf6   :  { %v289_v14 = vrot.slane %v1823_v44, 1 }
  0xf7   :  { %v290_v17 = vrot.slane %v1826_v45, 1 }
  0xfa   :  { %v239_v46 = vpop.f32.mrb[0].mxu1 }
  0xfb   :  { %v240_v47 = vadd.f32 %v239_v46, %v1823_v44  ;;  %v241_v48 = vpop.f32.mrb[1].mxu1 }
  0xfc   :  { %v242_v49 = vadd.f32 %v241_v48, %v1826_v45 }
  0xfd   :  { %v244_v53 = vmul.f32 0.5, %v240_v47  ;;  %v397_v47 = vrot.slane %v1823_v44, 2 }
  0xfe   :  { %1496 = vtanh.f32 %v242_v49  ;;  %v245_v1 = vmul.f32 0.5, %v242_v49  ;;  %v398_v49 = vrot.slane %v1826_v45, 2 }
  0xff   :  { %1498 = vtanh.f32 %v244_v53 }
 0x108   :  { %v1497_v51 = vpop.eup %1496 }
 0x109   :  { %263 = vrot.lane.b32.xlu0 %v1497_v51, %s1668_s3  ;;  %v1499_v54 = vpop.eup %1498 }
 0x10a   :  { %v248_v55 = vmul.f32 0.5, %v1499_v54 }
 0x10c   :  { %v250_v56 = vadd.f32 0.5, %v248_v55 }
 0x10d   :  { %258 = vrot.lane.b32.xlu0 %v257_v52, %s1668_s3 }
 0x17b   :  { %v264_v57 = vpop.permute.xlu0 %263 }
 0x17c   :  { %v266_v58 = vmul.f32 %v264_v57, %v250_v56 }
 0x17e   :  { %268 = vrot.lane.b32.xlu1 %v266_v58, %s1668_s3 }
 0x17f   :  { %v259_v59 = vpop.permute.xlu0 %258 }
 0x180   :  { %v261_v60 = vmul.f32 %v259_v59, %v250_v56 }
 0x1f0   :  { %v269_v61 = vpop.permute.xlu1 %268 }
 0x1f1   :  { %v271_v62 = vadd.f32 %v269_v61, %v261_v60 }
 0x1f3   :  { %1500 = vtanh.f32 %v271_v62  ;;  %282 = vrot.lane.b32.xlu0 %v271_v62, %s1668_s3 }
 0x1f4   :  { %1502 = vtanh.f32 %v245_v1 }
 0x1fd   :  { %v1501_v63 = vpop.eup %1500 }
 0x1fe   :  { %274 = vrot.lane.b32.xlu1 %v1501_v63, %s1668_s3  ;;  %v1503_v6 = vpop.eup %1502 }
 0x1ff   :  { %v249_v7 = vmul.f32 0.5, %v1503_v6 }
 0x201   :  { %v251_v10 = vadd.f32 0.5, %v249_v7 }
 0x265   :  { %v283_v3 = vpop.permute.xlu0 %282 }
 0x266   :  { %v285_v5 = vsel %vm279_vm3, %v283_v3, %v166_v50 }
 0x267   :  { %377 = vrot.lane.b32.xlu0 %v285_v5, %s1668_s3 }
 0x270   :  { %v275_v11 = vpop.permute.xlu1 %274 }
 0x271   :  { %v277_v12 = vmul.f32 %v275_v11, %v251_v10  ;;  %v501_v11 = vrot.slane %v1823_v44, 3 }
 0x273   :  { %v286_v13 = vsel %vm279_vm3, %v277_v12, %v1791_v33 }
 0x274   :  { %1305 = vmatmul.mubr.msk.f32.vlgmr.msra.gmra.mrb[2].mxu0 %vm169_vm2, %v286_v13  ;;  %v502_v13 = vrot.slane %v1826_v45, 3 }
 0x275   :  { %1386 = vmatpush1.bf16.msra.mxu0 %v1746_v8  ;;  %572 = vmatprep.mubr.f32.mxu0 %v1667_v0 }
 0x276   :  { %1388 = vmatprep.subr.bf16.mxu0 %v1748_v9 }
 0x279   :  { %1390 = vmatpush1.bf16.msra.mxu0 %v1758_v16 }
 0x27a   :  { %1392 = vmatprep.subr.bf16.mxu0 %v1764_v19 }
 0x27d   :  { %1394 = vmatpush1.bf16.msra.mxu0 %v1773_v27 }
 0x27e   :  { %1396 = vmatprep.subr.bf16.mxu0 %v1780_v29 }
 0x281   :  { %1398 = vmatpush1.bf16.msra.mxu0 %v1784_v32 }
 0x282   :  { %1416 = vmatprep.subr.bf16.mxu0 %v1744_v4 }
 0x2d9   :  { %v378_v31 = vpop.permute.xlu0 %377 }
 0x347   :  { %v362_v15 = vpop.f32.mrb[2].mxu0 }
 0x348   :  { %v363_v18 = vadd.f32 %v362_v15, %v289_v14  ;;  %v364_v20 = vpop.f32.mrb[3].mxu0 }
 0x349   :  { %v365_v21 = vadd.f32 %v364_v20, %v290_v17 }
 0x34a   :  { %v367_v23 = vmul.f32 0.5, %v363_v18 }
 0x34b   :  { %1504 = vtanh.f32 %v365_v21  ;;  %v368_v37 = vmul.f32 0.5, %v365_v21 }
 0x34c   :  { %1506 = vtanh.f32 %v367_v23 }
 0x355   :  { %v1505_v22 = vpop.eup %1504 }
 0x356   :  { %382 = vrot.lane.b32.xlu1 %v1505_v22, %s1668_s3  ;;  %v1507_v24 = vpop.eup %1506 }
 0x357   :  { %v371_v25 = vmul.f32 0.5, %v1507_v24 }
 0x359   :  { %v373_v26 = vadd.f32 0.5, %v371_v25 }
 0x35b   :  { %v380_v33 = vmul.f32 %v378_v31, %v373_v26 }
 0x3c8   :  { %v383_v28 = vpop.permute.xlu1 %382 }
 0x3c9   :  { %v385_v30 = vmul.f32 %v383_v28, %v373_v26 }
 0x3cb   :  { %387 = vrot.lane.b32.xlu1 %v385_v30, %s1668_s3 }
 0x43d   :  { %v388_v34 = vpop.permute.xlu1 %387 }
 0x43e   :  { %v390_v35 = vadd.f32 %v388_v34, %v380_v33 }
 0x440   :  { %1508 = vtanh.f32 %v390_v35 }
 0x441   :  { %1510 = vtanh.f32 %v368_v37 }
 0x44a   :  { %v1509_v36 = vpop.eup %1508 }
 0x44b   :  { %393 = vrot.lane.b32.xlu0 %v1509_v36, %s1668_s3  ;;  %v1511_v38 = vpop.eup %1510 }
 0x44c   :  { %v372_v39 = vmul.f32 0.5, %v1511_v38 }
 0x44e   :  { %v374_v40 = vadd.f32 0.5, %v372_v39 }
 0x4bd   :  { %v394_v42 = vpop.permute.xlu0 %393 }
 0x4be   :  { %v1855_v46 = vmul.f32 %v394_v42, %v374_v40 }
 0x4c0   :  { %1306 = vmatmul.mubr.msk.f32.vlgmr.msra.gmra.mrb[2].mxu1 %vm169_vm2, %v1855_v46 }
 0x4c1   :  { %1402 = vmatpush1.bf16.msra.mxu1 %v1746_v8  ;;  %676 = vmatprep.mubr.f32.mxu1 %v1667_v0 }
 0x4c2   :  { %1404 = vmatprep.subr.bf16.mxu1 %v1748_v9 }
 0x4c5   :  { %1406 = vmatpush1.bf16.msra.mxu1 %v1758_v16 }
 0x4c6   :  { %1408 = vmatprep.subr.bf16.mxu1 %v1764_v19 }
 0x4c9   :  { %1410 = vmatpush1.bf16.msra.mxu1 %v1773_v27 }
 0x4ca   :  { %1412 = vmatprep.subr.bf16.mxu1 %v1780_v29 }
 0x4cd   :  { %1414 = vmatpush1.bf16.msra.mxu1 %v1784_v32 }
 0x4ce   :  { %1432 = vmatprep.subr.bf16.mxu1 %v1744_v4 }
 0x593   :  { %v470_v48 = vpop.f32.mrb[2].mxu1 }
 0x594   :  { %v471_v50 = vadd.f32 %v470_v48, %v397_v47  ;;  %v472_v51 = vpop.f32.mrb[3].mxu1 }
 0x595   :  { %v473_v52 = vadd.f32 %v472_v51, %v398_v49  ;;  %v606_v49 = vrot.slane %v1826_v45, 4 }
 0x596   :  { %v475_v54 = vmul.f32 0.5, %v471_v50 }
 0x597   :  { %1512 = vtanh.f32 %v473_v52  ;;  %v476_v1 = vmul.f32 0.5, %v473_v52 }
 0x598   :  { %1514 = vtanh.f32 %v475_v54 }
 0x5a1   :  { %v1513_v53 = vpop.eup %1512 }
 0x5a2   :  { %486 = vrot.lane.b32.xlu1 %v1513_v53, %s1668_s3  ;;  %v1515_v55 = vpop.eup %1514 }
 0x5a3   :  { %v479_v56 = vmul.f32 0.5, %v1515_v55 }
 0x5a5   :  { %v481_v57 = vadd.f32 0.5, %v479_v56 }
 0x5a7   :  { %v484_v60 = vmul.f32 %v481_v57, %v390_v35 }
 0x614   :  { %v487_v58 = vpop.permute.xlu1 %486 }
 0x615   :  { %v489_v59 = vmul.f32 %v487_v58, %v481_v57 }
 0x617   :  { %491 = vrot.lane.b32.xlu0 %v489_v59, %s1668_s3 }
 0x689   :  { %v492_v61 = vpop.permute.xlu0 %491 }
 0x68a   :  { %v494_v62 = vadd.f32 %v492_v61, %v484_v60 }
 0x68c   :  { %1516 = vtanh.f32 %v494_v62 }
 0x68d   :  { %1518 = vtanh.f32 %v476_v1 }
 0x696   :  { %v1517_v63 = vpop.eup %1516 }
 0x697   :  { %497 = vrot.lane.b32.xlu1 %v1517_v63, %s1668_s3  ;;  %v1519_v3 = vpop.eup %1518 }
 0x698   :  { %v480_v5 = vmul.f32 0.5, %v1519_v3 }
 0x69a   :  { %v482_v6 = vadd.f32 0.5, %v480_v5 }
 0x709   :  { %v498_v7 = vpop.permute.xlu1 %497 }
 0x70a   :  { %v500_v10 = vmul.f32 %v498_v7, %v482_v6 }
 0x70c   :  { %1307 = vmatmul.mubr.msk.f32.vlgmr.msra.gmra.mrb[4].mxu0 %vm169_vm2, %v500_v10  ;;  %v1134_v37 = vrot.slane %v500_v10, 7 }
 0x70d   :  { %1418 = vmatpush1.bf16.msra.mxu0 %v1746_v8  ;;  %780 = vmatprep.mubr.f32.mxu0 %v1667_v0 }
 0x70e   :  { %1420 = vmatprep.subr.bf16.mxu0 %v1748_v9  ;;  %v1150_v42 = vsel %vm1149_vm4, %v1855_v46, %v1134_v37  ;;  %v605_v46 = vrot.slane %v1823_v44, 4 }
 0x711   :  { %1422 = vmatpush1.bf16.msra.mxu0 %v1758_v16 }
 0x712   :  { %1424 = vmatprep.subr.bf16.mxu0 %v1764_v19 }
 0x715   :  { %1426 = vmatpush1.bf16.msra.mxu0 %v1773_v27 }
 0x716   :  { %1428 = vmatprep.subr.bf16.mxu0 %v1780_v29 }
 0x719   :  { %1430 = vmatpush1.bf16.msra.mxu0 %v1784_v32 }
 0x71a   :  { %1448 = vmatprep.subr.bf16.mxu0 %v1744_v4 }
 0x7df   :  { %v574_v12 = vpop.f32.mrb[4].mxu0 }
 0x7e0   :  { %v575_v14 = vadd.f32 %v574_v12, %v501_v11  ;;  %v576_v15 = vpop.f32.mrb[5].mxu0  ;;  %v709_v12 = vrot.slane %v1823_v44, 5 }
 0x7e1   :  { %v577_v17 = vadd.f32 %v576_v15, %v502_v13 }
 0x7e2   :  { %v579_v20 = vmul.f32 0.5, %v575_v14  ;;  %v710_v14 = vrot.slane %v1826_v45, 5 }
 0x7e3   :  { %1520 = vtanh.f32 %v577_v17  ;;  %v580_v33 = vmul.f32 0.5, %v577_v17 }
 0x7e4   :  { %1522 = vtanh.f32 %v579_v20 }
 0x7ed   :  { %v1521_v18 = vpop.eup %1520 }
 0x7ee   :  { %590 = vrot.lane.b32.xlu0 %v1521_v18, %s1668_s3  ;;  %v1523_v21 = vpop.eup %1522 }
 0x7ef   :  { %v583_v22 = vmul.f32 0.5, %v1523_v21 }
 0x7f1   :  { %v585_v23 = vadd.f32 0.5, %v583_v22 }
 0x7f3   :  { %v588_v26 = vmul.f32 %v585_v23, %v494_v62 }
 0x860   :  { %v591_v24 = vpop.permute.xlu0 %590 }
 0x861   :  { %v593_v25 = vmul.f32 %v591_v24, %v585_v23 }
 0x863   :  { %595 = vrot.lane.b32.xlu1 %v593_v25, %s1668_s3 }
 0x8d5   :  { %v596_v28 = vpop.permute.xlu1 %595 }
 0x8d6   :  { %v598_v30 = vadd.f32 %v596_v28, %v588_v26 }
 0x8d8   :  { %1524 = vtanh.f32 %v598_v30 }
 0x8d9   :  { %1526 = vtanh.f32 %v580_v33 }
 0x8e2   :  { %v1525_v31 = vpop.eup %1524 }
 0x8e3   :  { %601 = vrot.lane.b32.xlu0 %v1525_v31, %s1668_s3  ;;  %v1527_v34 = vpop.eup %1526 }
 0x8e4   :  { %v584_v35 = vmul.f32 0.5, %v1527_v34 }
 0x8e6   :  { %v586_v36 = vadd.f32 0.5, %v584_v35 }
 0x955   :  { %v602_v38 = vpop.permute.xlu0 %601 }
 0x956   :  { %v604_v39 = vmul.f32 %v602_v38, %v586_v36 }
 0x958   :  { %v1136_v40 = vrot.slane %v604_v39, 6  ;;  %1308 = vmatmul.mubr.msk.f32.vlgmr.msra.gmra.mrb[4].mxu1 %vm169_vm2, %v604_v39 }
 0x959   :  { %1434 = vmatpush1.bf16.msra.mxu1 %v1746_v8  ;;  %884 = vmatprep.mubr.f32.mxu1 %v1667_v0 }
 0x95a   :  { %v1152_v47 = vsel %vm1151_vm5, %v1150_v42, %v1136_v40  ;;  %1436 = vmatprep.subr.bf16.mxu1 %v1748_v9 }
 0x95d   :  { %1438 = vmatpush1.bf16.msra.mxu1 %v1758_v16 }
 0x95e   :  { %1440 = vmatprep.subr.bf16.mxu1 %v1764_v19 }
 0x961   :  { %1442 = vmatpush1.bf16.msra.mxu1 %v1773_v27 }
 0x962   :  { %1444 = vmatprep.subr.bf16.mxu1 %v1780_v29 }
 0x965   :  { %1446 = vmatpush1.bf16.msra.mxu1 %v1784_v32 }
 0x966   :  { %1464 = vmatprep.subr.bf16.mxu1 %v1744_v4 }
 0xa2b   :  { %v678_v48 = vpop.f32.mrb[4].mxu1 }
 0xa2c   :  { %v679_v50 = vadd.f32 %v678_v48, %v605_v46  ;;  %v680_v51 = vpop.f32.mrb[5].mxu1 }
 0xa2d   :  { %v681_v52 = vadd.f32 %v680_v51, %v606_v49 }
 0xa2e   :  { %v683_v54 = vmul.f32 0.5, %v679_v50 }
 0xa2f   :  { %1528 = vtanh.f32 %v681_v52  ;;  %v684_v63 = vmul.f32 0.5, %v681_v52 }
 0xa30   :  { %1530 = vtanh.f32 %v683_v54 }
 0xa39   :  { %v1529_v53 = vpop.eup %1528 }
 0xa3a   :  { %694 = vrot.lane.b32.xlu1 %v1529_v53, %s1668_s3  ;;  %v1531_v55 = vpop.eup %1530 }
 0xa3b   :  { %v687_v56 = vmul.f32 0.5, %v1531_v55 }
 0xa3d   :  { %v689_v57 = vadd.f32 0.5, %v687_v56 }
 0xa3f   :  { %v692_v4 = vmul.f32 %v689_v57, %v598_v30 }
 0xaac   :  { %v695_v58 = vpop.permute.xlu1 %694 }
 0xaad   :  { %v697_v59 = vmul.f32 %v695_v58, %v689_v57 }
 0xaaf   :  { %699 = vrot.lane.b32.xlu0 %v697_v59, %s1668_s3 }
 0xb21   :  { %v700_v60 = vpop.permute.xlu0 %699 }
 0xb22   :  { %v702_v61 = vadd.f32 %v700_v60, %v692_v4 }
 0xb24   :  { %1532 = vtanh.f32 %v702_v61 }
 0xb25   :  { %1534 = vtanh.f32 %v684_v63  ;;  %v917_v63 = vrot.slane %v1823_v44, 7 }
 0xb2e   :  { %v1533_v62 = vpop.eup %1532 }
 0xb2f   :  { %705 = vrot.lane.b32.xlu1 %v1533_v62, %s1668_s3  ;;  %v1535_v1 = vpop.eup %1534 }
 0xb30   :  { %v688_v3 = vmul.f32 0.5, %v1535_v1 }
 0xb32   :  { %v690_v5 = vadd.f32 0.5, %v688_v3  ;;  %v918_v3 = vrot.slane %v1826_v45, 7 }
 0xba1   :  { %v706_v6 = vpop.permute.xlu1 %705 }
 0xba2   :  { %v708_v7 = vmul.f32 %v706_v6, %v690_v5 }
 0xba4   :  { %v1138_v10 = vrot.slane %v708_v7, 5  ;;  %1309 = vmatmul.mubr.msk.f32.vlgmr.msra.gmra.mrb[6].mxu0 %vm169_vm2, %v708_v7 }
 0xba5   :  { %1450 = vmatpush1.bf16.msra.mxu0 %v1746_v8  ;;  %988 = vmatprep.mubr.f32.mxu0 %v1667_v0 }
 0xba6   :  { %v1154_v11 = vsel %vm1153_vm6, %v1152_v47, %v1138_v10  ;;  %1452 = vmatprep.subr.bf16.mxu0 %v1748_v9  ;;  %v813_v47 = vrot.slane %v1823_v44, 6 }
 0xba9   :  { %1454 = vmatpush1.bf16.msra.mxu0 %v1758_v16 }
 0xbaa   :  { %1456 = vmatprep.subr.bf16.mxu0 %v1764_v19 }
 0xbad   :  { %1458 = vmatpush1.bf16.msra.mxu0 %v1773_v27 }
 0xbae   :  { %1460 = vmatprep.subr.bf16.mxu0 %v1780_v29 }
 0xbb1   :  { %1462 = vmatpush1.bf16.msra.mxu0 %v1784_v32 }
 0xc77   :  { %v782_v13 = vpop.f32.mrb[6].mxu0 }
 0xc78   :  { %v783_v15 = vadd.f32 %v782_v13, %v709_v12  ;;  %v784_v17 = vpop.f32.mrb[7].mxu0 }
 0xc79   :  { %v785_v18 = vadd.f32 %v784_v17, %v710_v14 }
 0xc7a   :  { %v787_v21 = vmul.f32 0.5, %v783_v15 }
 0xc7b   :  { %1536 = vtanh.f32 %v785_v18  ;;  %v788_v34 = vmul.f32 0.5, %v785_v18 }
 0xc7c   :  { %1538 = vtanh.f32 %v787_v21 }
 0xc85   :  { %v1537_v20 = vpop.eup %1536 }
 0xc86   :  { %798 = vrot.lane.b32.xlu0 %v1537_v20, %s1668_s3  ;;  %v1539_v22 = vpop.eup %1538 }
 0xc87   :  { %v791_v23 = vmul.f32 0.5, %v1539_v22 }
 0xc89   :  { %v793_v24 = vadd.f32 0.5, %v791_v23 }
 0xc8b   :  { %v796_v28 = vmul.f32 %v793_v24, %v702_v61 }
 0xcf8   :  { %v799_v25 = vpop.permute.xlu0 %798 }
 0xcf9   :  { %v801_v26 = vmul.f32 %v799_v25, %v793_v24 }
 0xcfb   :  { %803 = vrot.lane.b32.xlu1 %v801_v26, %s1668_s3 }
 0xd6d   :  { %v804_v30 = vpop.permute.xlu1 %803 }
 0xd6e   :  { %v806_v31 = vadd.f32 %v804_v30, %v796_v28 }
 0xd70   :  { %1540 = vtanh.f32 %v806_v31 }
 0xd71   :  { %1542 = vtanh.f32 %v788_v34 }
 0xd7a   :  { %v1541_v33 = vpop.eup %1540 }
 0xd7b   :  { %809 = vrot.lane.b32.xlu0 %v1541_v33, %s1668_s3  ;;  %v1543_v35 = vpop.eup %1542 }
 0xd7c   :  { %v792_v36 = vmul.f32 0.5, %v1543_v35 }
 0xd7e   :  { %v794_v37 = vadd.f32 0.5, %v792_v36 }
 0xded   :  { %v810_v38 = vpop.permute.xlu0 %809 }
 0xdee   :  { %v812_v39 = vmul.f32 %v810_v38, %v794_v37 }
 0xdf0   :  { %v1140_v40 = vrot.slane %v812_v39, 4  ;;  %1310 = vmatmul.mubr.msk.f32.vlgmr.msra.gmra.mrb[6].mxu1 %vm169_vm2, %v812_v39 }
 0xdf1   :  { %1466 = vmatpush1.bf16.msra.mxu1 %v1746_v8  ;;  %1088 = vmatprep.mubr.f32.mxu1 %v1667_v0  ;;  %v814_v8 = vrot.slane %v1826_v45, 6 }
 0xdf2   :  { %v1156_v42 = vsel %vm1155_vm7, %v1154_v11, %v1140_v40  ;;  %1468 = vmatprep.subr.bf16.mxu1 %v1748_v9 }
 0xdf5   :  { %1470 = vmatpush1.bf16.msra.mxu1 %v1758_v16 }
 0xdf6   :  { %1472 = vmatprep.subr.bf16.mxu1 %v1764_v19 }
 0xdf9   :  { %1474 = vmatpush1.bf16.msra.mxu1 %v1773_v27 }
 0xdfa   :  { %1476 = vmatprep.subr.bf16.mxu1 %v1780_v29 }
 0xdfd   :  { %1478 = vmatpush1.bf16.msra.mxu1 %v1784_v32 }
 0xec3   :  { %v886_v46 = vpop.f32.mrb[6].mxu1 }
 0xec4   :  { %v887_v48 = vadd.f32 %v886_v46, %v813_v47  ;;  %v888_v49 = vpop.f32.mrb[7].mxu1 }
 0xec5   :  { %v889_v50 = vadd.f32 %v888_v49, %v814_v8  ;;  %v1165_v8 = vld [vmem:[%s2024_s4 + $0x10] sm:$0xff] }
 0xec6   :  { %v891_v16 = vmul.f32 0.5, %v887_v48  ;;  %v1669_v48 = vmov 0.0|0.0  }
 0xec7   :  { %1544 = vtanh.f32 %v889_v50  ;;  %v892_v56 = vmul.f32 0.5, %v889_v50  ;;  %1479 = vmatprep.subr.bf16.mxu0 %v1669_v48  ;;  %v1166_v50 = vld [vmem:[%s2024_s4 + $0x18] sm:$0xff] }
 0xec8   :  { %1546 = vtanh.f32 %v891_v16  ;;  %v1483_v16 = vpack.c.bf16 %v1166_v50, %v1165_v8 }
 0xed1   :  { %v1545_v9 = vpop.eup %1544 }
 0xed2   :  { %902 = vrot.lane.b32.xlu1 %v1545_v9, %s1668_s3  ;;  %v1547_v19 = vpop.eup %1546 }
 0xed3   :  { %v895_v27 = vmul.f32 0.5, %v1547_v19 }
 0xed5   :  { %v897_v51 = vadd.f32 0.5, %v895_v27 }
 0xed7   :  { %v900_v32 = vmul.f32 %v897_v51, %v806_v31 }
 0xf44   :  { %v903_v29 = vpop.permute.xlu1 %902 }
 0xf45   :  { %v905_v52 = vmul.f32 %v903_v29, %v897_v51 }
 0xf47   :  { %907 = vrot.lane.b32.xlu0 %v905_v52, %s1668_s3 }
 0xfb9   :  { %v908_v53 = vpop.permute.xlu0 %907 }
 0xfba   :  { %v910_v54 = vadd.f32 %v908_v53, %v900_v32 }
 0xfbc   :  { %1548 = vtanh.f32 %v910_v54 }
 0xfbd   :  { %1550 = vtanh.f32 %v892_v56 }
 0xfc6   :  { %v1549_v55 = vpop.eup %1548 }
 0xfc7   :  { %913 = vrot.lane.b32.xlu1 %v1549_v55, %s1668_s3  ;;  %v1551_v57 = vpop.eup %1550 }
 0xfc8   :  { %v896_v58 = vmul.f32 0.5, %v1551_v57 }
 0xfca   :  { %v898_v59 = vadd.f32 0.5, %v896_v58 }
0x1039   :  { %v914_v4 = vpop.permute.xlu1 %913 }
0x103a   :  { %v916_v60 = vmul.f32 %v914_v4, %v898_v59 }
0x103c   :  { %v1142_v61 = vrot.slane %v916_v60, 3  ;;  %1311 = vmatmul.mubr.msk.f32.vlgmr.msra.gmra.mrb[8].mxu0 %vm169_vm2, %v916_v60 }
0x103d   :  { %1328 = vmatprep.mubr.msk.f32.mxu0 %vm1670_vm9, %v1667_v0 }
0x103e   :  { %v1933_v62 = vsel %vm1157_vm8, %v1156_v42, %v1142_v61 }
0x110f   :  { %v990_v1 = vpop.f32.mrb[8].mxu0 }
0x1110   :  { %v991_v5 = vadd.f32 %v990_v1, %v917_v63  ;;  %v992_v6 = vpop.f32.mrb[9].mxu0 }
0x1111   :  { %v993_v7 = vadd.f32 %v992_v6, %v918_v3 }
0x1112   :  { %v995_v11 = vmul.f32 0.5, %v991_v5 }
0x1113   :  { %1552 = vtanh.f32 %v993_v7  ;;  %v996_v21 = vmul.f32 0.5, %v993_v7 }
0x1114   :  { %1554 = vtanh.f32 %v995_v11 }
0x111d   :  { %v1553_v10 = vpop.eup %1552 }
0x111e   :  { %1006 = vrot.lane.b32.xlu0 %v1553_v10, %s1668_s3  ;;  %v1555_v12 = vpop.eup %1554 }
0x111f   :  { %v999_v13 = vmul.f32 0.5, %v1555_v12 }
0x1121   :  { %v1001_v14 = vadd.f32 0.5, %v999_v13 }
0x1123   :  { %v1004_v44 = vmul.f32 %v1001_v14, %v910_v54 }
0x1190   :  { %v1007_v15 = vpop.permute.xlu0 %1006 }
0x1191   :  { %v1009_v17 = vmul.f32 %v1007_v15, %v1001_v14 }
0x1193   :  { %1011 = vrot.lane.b32.xlu1 %v1009_v17, %s1668_s3 }
0x1205   :  { %v1012_v18 = vpop.permute.xlu1 %1011 }
0x1206   :  { %v1939_v20 = vadd.f32 %v1012_v18, %v1004_v44 }
0x1208   :  { %1556 = vtanh.f32 %v1939_v20 }
0x1209   :  { %1558 = vtanh.f32 %v996_v21 }
0x1212   :  { %v1557_v45 = vpop.eup %1556 }
0x1213   :  { %1017 = vrot.lane.b32.xlu0 %v1557_v45, %s1668_s3  ;;  %v1559_v22 = vpop.eup %1558 }
0x1214   :  { %v1000_v23 = vmul.f32 0.5, %v1559_v22 }
0x1216   :  { %v1002_v24 = vadd.f32 0.5, %v1000_v23 }
0x1285   :  { %v1018_v25 = vpop.permute.xlu0 %1017 }
0x1286   :  { %v1020_v26 = vmul.f32 %v1018_v25, %v1002_v24 }
0x1288   :  { %1312 = vmatmul.mubr.msk.f32.vlgmr.msra.gmra.mrb[8].mxu1 %vm169_vm2, %v1020_v26  ;;  %v1144_v32 = vrot.slane %v1020_v26, 2 }
0x128a   :  { %v1160_v2 = vsel %vm1159_vm13, %v1933_v62, %v1144_v32 }
0x135b   :  { %v1090_v28 = vpop.f32.mrb[8].mxu1 }
0x135c   :  { %v1092_v30 = vpop.f32.mrb[9].mxu1  ;;  %v1091_v34 = vadd.f32 %v1090_v28, %v1818_v41  ;;  %v1164_v41 = vld [vmem:[%s2024_s4 + $0x8] sm:$0xff] }
0x135d   :  { %v1093_v31 = vadd.f32 %v1092_v30, %v1820_v43  ;;  %v1163_v43 = vld [vmem:[%s2024_s4] sm:$0xff]  ;;  %s1671_s4 = smov 96  }
0x135e   :  { %v1095_v35 = vmul.f32 0.5, %v1091_v34  ;;  %v1480_v49 = vpack.c.bf16 %v1164_v41, %v1163_v43 }
0x135f   :  { %1560 = vtanh.f32 %v1093_v31  ;;  %v1096_v19 = vmul.f32 0.5, %v1093_v31 }
0x1360   :  { %1562 = vtanh.f32 %v1095_v35  ;;  %1481 = vmatpush3.bf16.msra.mxu0 %v1480_v49 }
0x1361   :  { %1482 = vmatprep.subr.bf16.mxu0 %v1669_v48 }
0x1364   :  { %1484 = vmatpush3.bf16.msra.mxu0 %v1483_v16 }
0x1369   :  { %v1561_v33 = vpop.eup %1560 }
0x136a   :  { %1106 = vrot.lane.b32.xlu1 %v1561_v33, %s1668_s3  ;;  %v1563_v36 = vpop.eup %1562 }
0x136b   :  { %v1099_v37 = vmul.f32 0.5, %v1563_v36 }
0x136d   :  { %v1101_v38 = vadd.f32 0.5, %v1099_v37 }
0x136f   :  { %v1104_v42 = vmul.f32 %v1101_v38, %v1939_v20 }
0x13dc   :  { %v1107_v39 = vpop.permute.xlu1 %1106 }
0x13dd   :  { %v1109_v40 = vmul.f32 %v1107_v39, %v1101_v38 }
0x13df   :  { %1111 = vrot.lane.b32.xlu0 %v1109_v40, %s1668_s3 }
0x1451   :  { %v1112_v47 = vpop.permute.xlu0 %1111 }
0x1452   :  { %v1114_v46 = vadd.f32 %v1112_v47, %v1104_v42 }
0x1454   :  { %1564 = vtanh.f32 %v1114_v46 }
0x1455   :  { %1566 = vtanh.f32 %v1096_v19 }
0x145e   :  { %v1565_v9 = vpop.eup %1564 }
0x145f   :  { %1117 = vrot.lane.b32.xlu1 %v1565_v9, %s1668_s3  ;;  %v1567_v27 = vpop.eup %1566 }
0x1460   :  { %v1100_v51 = vmul.f32 0.5, %v1567_v27 }
0x1462   :  { %v1102_v29 = vadd.f32 0.5, %v1100_v51 }
0x1463   :  { %1125 = vrot.lane.b32.xlu1 %v1114_v46, %s1668_s3 }
0x14d1   :  { %v1118_v52 = vpop.permute.xlu1 %1117 }
0x14d2   :  { %v1120_v53 = vmul.f32 %v1118_v52, %v1102_v29 }
0x14d4   :  { %v1133_v54 = vsel %vm1966_vm12, %v1120_v53, %v1020_v26 }
0x14d5   :  { %1257 = vst.msk [vmem:[#allocation2] sm:$0x1] %vm53_vm0, %v1133_v54  ;;  %1259 = vst.msk [vmem:[#allocation8] sm:$0x1] %vm53_vm0, %v1133_v54  ;;  %v1147_v55 = vrot.slane %v1133_v54, 1  ;;  %v1126_v58 = vpop.permute.xlu1 %1125 }
0x14d7   :  { %v1162_v56 = vsel %vm1161_vm14, %v1160_v2, %v1147_v55 }
0x14d8   :  { %1175 = vrot.lane.b32.xlu0 %v1162_v56, %s1671_s4 }
0x14dc   :  { %1129 = vrot.lane.b32.xlu0 %v1939_v20, %s1668_s3 }
0x154a   :  { %v1176_v57 = vpop.permute.xlu0 %1175 }
0x154b   :  { %1329 = vmatmul.mubr.msk.f32.vlgmr.msra.gmra.mrb[10].mxu0 %vm1177_vm15, %v1176_v57 }
0x154e   :  { %v1130_v59 = vpop.permute.xlu0 %1129 }
0x154f   :  { %v1132_v4 = vsel %vm1966_vm12, %v1126_v58, %v1130_v59 }
0x1550   :  { %1258 = vst.msk [vmem:[#allocation3] sm:$0x1] %vm53_vm0, %v1132_v4  ;;  %1260 = vst.msk [vmem:[#allocation10] sm:$0x1] %vm53_vm0, %v1132_v4 }
0x1551   :  { %1603 = shalt.err (!%p1600_p12)
}
0x1552   :  { %s1604_s11 = scalar_lea.hbm %s2029_s9, 16 }
0x1553   :  { %p1605_p13 = scmp.ne.s32.totalorder %s2029_s9, %s1604_s11  ;;  %p1608_p0 = scmp.lt.u32.totalorder %s1604_s11, %s2029_s9 }
0x1555   :  { %p1610_p1 = pnand %p1608_p0, %p1605_p13 }
0x1557   :  { %1613 = shalt.err (!%p1610_p1)
}
0x1558   :  { %1280 = dma.vmem_to_hbm [thread:$0]  %s1278_s2, 16, %s2029_s9, [#allocation9]  }
0x1559   :  { %s1673_s0 = smov [#allocation10]  }
0x155a   :  { %s1287_s1 = sshll.u32 %s1673_s0, 4  ;;  %s1288_s1 = int_to_ptr.vmem [resolvable:$true] %s1287_s1 }
0x155b   :  { %s1614_s6 = scalar_lea.vmem %s1288_s1, 16  ;;  %s1618_s18 = scalar_lea.vmem %s1288_s1, 32 }
0x155c   :  { %p1615_p2 = scmp.ne.s32.totalorder %s1288_s1, %s1614_s6  ;;  %p1619_p3 = scmp.lt.s32.totalorder %s1288_s1, %s1288_s1 }
0x155d   :  { %p1620_p4 = scmp.lt.s32.totalorder %s1618_s18, %s1614_s6 }
0x155f   :  { %p1621_p5 = por %p1620_p4, %p1619_p3 }
0x1561   :  { %p1622_p6 = pnand %p1621_p5, %p1615_p2 }
0x1563   :  { %1625 = shalt.err (!%p1622_p6)
}
0x1564   :  { %s1626_s19 = scalar_lea.hbm %s2030_s10, 16 }
0x1565   :  { %p1627_p7 = scmp.ne.s32.totalorder %s2030_s10, %s1626_s19  ;;  %p1630_p8 = scmp.lt.u32.totalorder %s1626_s19, %s2030_s10 }
0x1567   :  { %p1632_p9 = pnand %p1630_p8, %p1627_p7 }
0x1569   :  { %1635 = shalt.err (!%p1632_p9)
}
0x156a   :  { %1290 = dma.vmem_to_hbm [thread:$0]  %s1288_s1, 16, %s2030_s10, [#allocation9]   ;;  %v1313_v60 = vld [vmem:[%s2025_s5] ss:$0 sm:$0xff]  ;;  %vm1254_vm0 = vcmask 64512  }
0x156b   :  { %s1674_s26 = smov [#allocation7]  }
0x156c   :  { %s1267_s2 = sshll.u32 %s1674_s26, 4  ;;  %s1268_s2 = int_to_ptr.vmem [resolvable:$true] %s1267_s2 }
0x156d   :  { %s1636_s27 = scalar_lea.vmem %s1268_s2, 128  ;;  %p1641_p11 = scmp.lt.s32.totalorder %s1268_s2, %s1268_s2 }
0x156e   :  { %p1637_p10 = scmp.ne.s32.totalorder %s1268_s2, %s1636_s27  ;;  %p1642_p12 = scmp.lt.s32.totalorder %s1636_s27, %s1636_s27 }
0x1570   :  { %p1643_p13 = por %p1642_p12, %p1641_p11 }
0x1572   :  { %p1644_p0 = pnand %p1643_p13, %p1637_p10 }
0x161e   :  { %v1246_v61 = vpop.f32.mrb[10].mxu0 }
0x161f   :  { %v1247_v62 = vadd.f32 %v1313_v60, %v1246_v61  ;;  %v1330_v63 = vpop.f32.mrb[11].mxu0 }
0x1621   :  { %v1250_v1 = vmul.f32 0.5, %v1247_v62 }
0x1623   :  { %1568 = vtanh.f32 %v1250_v1 }
0x162d   :  { %v1569_v3 = vpop.eup %1568 }
0x162e   :  { %v1252_v5 = vmul.f32 0.5, %v1569_v3 }
0x1630   :  { %v1253_v6 = vadd.f32 0.5, %v1252_v5 }
0x1632   :  { %1255 = vst.msk [vmem:[#allocation7] sm:$0xff] %vm1254_vm0, %v1253_v6 }
0x1633   :  { %1647 = shalt.err (!%p1644_p0)
}
0x1634   :  { %s1648_s28 = scalar_lea.hbm %s2028_s8, 128 }
0x1635   :  { %p1649_p1 = scmp.ne.s32.totalorder %s2028_s8, %s1648_s28  ;;  %p1652_p2 = scmp.lt.u32.totalorder %s1648_s28, %s2028_s8 }
0x1637   :  { %p1654_p3 = pnand %p1652_p2, %p1649_p1 }
0x1639   :  { %1657 = shalt.err (!%p1654_p3)
}
0x163a   :  { %1270 = dma.vmem_to_hbm [thread:$0]  %s1268_s2, 128, %s2028_s8, [#allocation6]  }
0x163b   :  { %1660 = dma.done.wait [#allocation6], 128  }
0x163c   :  { %1661 = vsyncadd [#allocation6], 4294967168 }
0x163d   :  { %1662 = dma.done.wait [#allocation9], 32  }
0x163e   :  { %1663 = vsyncadd [#allocation9], 4294967264 }
0x163f   :  { %1300 = vsyncpa [#allocation5], 1 }
0x1640   :  { %1301 = vsyncpa [#allocation6], 1 }
0x1641   :  { %1302 = vsyncpa [#allocation9], 1 }

</bundles_post_ra>
